<compile_context>
chip_gen: v6e
topology: v6e:2x2x1
jax: 0.10.0
libtpu: 0.0.40
codegen_flags: <defaults>
</compile_context>

<pallas_src>
import functools
import math

import jax
import jax.numpy as jnp
from jax.experimental import pallas as pl
from jax.experimental.pallas import tpu as pltpu


# ----------------------------------------------------------------------------
# Tiling helpers
# ----------------------------------------------------------------------------
def _choose_tile(dim, target, align):
    """Largest tile <= target that divides `dim` and is a multiple of `align`.
    Falls back to the full dim (block == full array dim is always legal)."""
    if dim <= target:
        return dim
    t = (target // align) * align
    while t >= align:
        if dim % t == 0:
            return t
        t -= align
    return dim


def _head_block_width(H, dh, n_heads):
    """Hidden-width of the per-grid-step head group for attention: smallest multiple
    of dh that divides H and is lane-dense (multiple of 128); else the full H."""
    for hpb in range(1, n_heads + 1):
        if n_heads % hpb == 0 and (hpb * dh) % 128 == 0:
            return hpb * dh
    return H


# ----------------------------------------------------------------------------
# Pallas kernels
# ----------------------------------------------------------------------------
def _linear_kernel(x_ref, w_ref, b_ref, o_ref, acc_ref, *, activation):
    # K-reduction accumulator pattern: init at k==0, finalize (bias + act) at k==last.
    @pl.when(pl.program_id(2) == 0)
    def _init():
        acc_ref[...] = jnp.zeros_like(acc_ref)

    acc_ref[...] += jnp.dot(x_ref[...], w_ref[...],
                            preferred_element_type=jnp.float32)

    @pl.when(pl.program_id(2) == pl.num_programs(2) - 1)
    def _finalize():
        y = acc_ref[...] + b_ref[...]
        if activation == "gelu":
            # exact (erf) GELU, matching HF Electra's "gelu", computed in f32
            y = 0.5 * y * (1.0 + jax.lax.erf(y * (2.0 ** -0.5)))
        o_ref[...] = y.astype(o_ref.dtype)


def _layernorm_kernel(*refs, eps, has_residual):
    if has_residual:
        x_ref, r_ref, g_ref, b_ref, o_ref = refs
        x = x_ref[...].astype(jnp.float32) + r_ref[...].astype(jnp.float32)
    else:
        x_ref, g_ref, b_ref, o_ref = refs
        x = x_ref[...].astype(jnp.float32)
    mean = jnp.mean(x, axis=-1, keepdims=True)
    var = jnp.mean(jnp.square(x - mean), axis=-1, keepdims=True)
    y = (x - mean) * jax.lax.rsqrt(var + eps) * g_ref[...] + b_ref[...]
    o_ref[...] = y.astype(o_ref.dtype)


def _attn_kernel(q_ref, k_ref, v_ref, m_ref, o_ref, *, hpb, dh, scale):
    bias = m_ref[0]  # [1, S] additive mask bias (f32), broadcast over query rows
    for h in range(hpb):
        lo, hi = h * dh, (h + 1) * dh
        q = q_ref[0, :, lo:hi] * scale          # fold scale into q (small tensor)
        k = k_ref[0, :, lo:hi]
        v = v_ref[0, :, lo:hi]
        # scores: contract head_dim of q and k without materializing a transpose
        s = jax.lax.dot_general(q, k, (((1,), (1,)), ((), ())),
                                preferred_element_type=jnp.float32)
        s = s + bias
        s = s - jnp.max(s, axis=-1, keepdims=True)
        p = jnp.exp(s)
        p = p * pl.reciprocal(jnp.sum(p, axis=-1, keepdims=True), approx=True)
        ctx = jnp.dot(p.astype(v.dtype), v, preferred_element_type=jnp.float32)
        o_ref[0, :, lo:hi] = ctx.astype(o_ref.dtype)


# ----------------------------------------------------------------------------
# Pallas wrappers
# ----------------------------------------------------------------------------
def pallas_linear(x, w, b, activation=None, out_dtype=jnp.bfloat16):
    M, K = x.shape
    N = w.shape[1]
    x = x.astype(jnp.bfloat16)                 # bf16 MXU inputs, f32 accumulation
    w = w.astype(jnp.bfloat16)
    b = b.reshape(1, N).astype(jnp.float32)

    tm = _choose_tile(M, 256, 16)
    tn = _choose_tile(N, 512, 128)
    tk = _choose_tile(K, 512, 128)
    grid = (M // tm, N // tn, K // tk)

    return pl.pallas_call(
        functools.partial(_linear_kernel, activation=activation),
        out_shape=jax.ShapeDtypeStruct((M, N), out_dtype),
        grid=grid,
        in_specs=[
            pl.BlockSpec((tm, tk), lambda i, j, k: (i, k)),
            pl.BlockSpec((tk, tn), lambda i, j, k: (k, j)),
            pl.BlockSpec((1, tn), lambda i, j, k: (0, j)),
        ],
        out_specs=pl.BlockSpec((tm, tn), lambda i, j, k: (i, j)),
        scratch_shapes=[pltpu.VMEM((tm, tn), jnp.float32)],
        compiler_params=pltpu.CompilerParams(
            dimension_semantics=("parallel", "parallel", "arbitrary")),
    )(x, w, b)


def pallas_layernorm(x, gamma, beta, residual=None, eps=1e-12, out_dtype=jnp.bfloat16):
    M, H = x.shape
    tm = _choose_tile(M, 512, 8)
    grid = (M // tm,)
    row_spec = pl.BlockSpec((tm, H), lambda i: (i, 0))
    vec_spec = pl.BlockSpec((1, H), lambda i: (0, 0))

    has_res = residual is not None
    in_specs = [row_spec] + ([row_spec] if has_res else []) + [vec_spec, vec_spec]
    args = (x,) + ((residual,) if has_res else ()) + (
        gamma.reshape(1, H).astype(jnp.float32),
        beta.reshape(1, H).astype(jnp.float32),
    )
    return pl.pallas_call(
        functools.partial(_layernorm_kernel, eps=eps, has_residual=has_res),
        out_shape=jax.ShapeDtypeStruct((M, H), out_dtype),
        grid=grid,
        in_specs=in_specs,
        out_specs=row_spec,
        compiler_params=pltpu.CompilerParams(dimension_semantics=("parallel",)),
    )(*args)


def pallas_attention(q, k, v, mask_bias, n_heads):
    B, S, H = q.shape
    dh = H // n_heads
    hb = _head_block_width(H, dh, n_heads)     # lane-dense head-group width
    nhb = H // hb
    hpb = hb // dh                             # heads per grid step

    head_spec = pl.BlockSpec((1, S, hb), lambda b, h: (b, 0, h))
    return pl.pallas_call(
        functools.partial(_attn_kernel, hpb=hpb, dh=dh, scale=1.0 / math.sqrt(dh)),
        out_shape=jax.ShapeDtypeStruct((B, S, H), q.dtype),
        grid=(B, nhb),
        in_specs=[
            head_spec, head_spec, head_spec,
            pl.BlockSpec((1, 1, S), lambda b, h: (b, 0, 0)),
        ],
        out_specs=head_spec,
        compiler_params=pltpu.CompilerParams(
            dimension_semantics=("parallel", "parallel")),
    )(q, k, v, mask_bias)


# ----------------------------------------------------------------------------
# Model (Electra encoder + qa_outputs head), deterministic synthetic weights
# ----------------------------------------------------------------------------
def init_params(key, *, vocab, max_pos, n_types, hidden, n_layers, n_heads, ffn, l_max):
    def nrm(k, shape):
        return 0.02 * jax.random.normal(k, shape, dtype=jnp.float32)

    bf16 = jnp.bfloat16
    keys = iter(jax.random.split(key, 8 + n_layers * 16))
    params = {
        "n_heads": n_heads,
        "word_emb": nrm(next(keys), (vocab, hidden)),
        "pos_emb": nrm(next(keys), (max_pos, hidden)),
        "type_emb": nrm(next(keys), (n_types, hidden)),
        "emb_ln_g": jnp.ones((hidden,), jnp.float32),
        "emb_ln_b": jnp.zeros((hidden,), jnp.float32),
        "qa_w": nrm(next(keys), (hidden, l_max)).astype(bf16),
        "qa_b": jnp.zeros((l_max,), jnp.float32),
        "layers": [],
    }
    for _ in range(n_layers):
        wq = nrm(next(keys), (hidden, hidden))
        wk = nrm(next(keys), (hidden, hidden))
        wv = nrm(next(keys), (hidden, hidden))
        layer = {
            # fused QKV projection: one [H, 3H] matmul instead of three [H, H]
            "w_qkv": jnp.concatenate([wq, wk, wv], axis=1).astype(bf16),
            "b_qkv": jnp.zeros((3 * hidden,), jnp.float32),
            "wo": nrm(next(keys), (hidden, hidden)).astype(bf16),
            "bo": jnp.zeros((hidden,), jnp.float32),
            "ln1_g": jnp.ones((hidden,), jnp.float32),
            "ln1_b": jnp.zeros((hidden,), jnp.float32),
            "w1": nrm(next(keys), (hidden, ffn)).astype(bf16),
            "b1": jnp.zeros((ffn,), jnp.float32),
            "w2": nrm(next(keys), (ffn, hidden)).astype(bf16),
            "b2": jnp.zeros((hidden,), jnp.float32),
            "ln2_g": jnp.ones((hidden,), jnp.float32),
            "ln2_b": jnp.zeros((hidden,), jnp.float32),
        }
        params["layers"].append(layer)
    return params


def encoder_layer(p, x, mask_bias, n_heads):
    B, S, H = x.shape
    xf = x.reshape(B * S, H)

    # Fused QKV projection, then split along the feature axis (no transposes).
    qkv = pallas_linear(xf, p["w_qkv"], p["b_qkv"]).reshape(B, S, 3 * H)
    q, k, v = qkv[:, :, :H], qkv[:, :, H:2 * H], qkv[:, :, 2 * H:]

    ctx = pallas_attention(q, k, v, mask_bias, n_heads)        # [B, S, H]
    attn_out = pallas_linear(ctx.reshape(B * S, H), p["wo"], p["bo"])
    x1 = pallas_layernorm(attn_out, p["ln1_g"], p["ln1_b"], residual=xf)

    h = pallas_linear(x1, p["w1"], p["b1"], activation="gelu")
    ffn_out = pallas_linear(h, p["w2"], p["b2"])
    x2 = pallas_layernorm(ffn_out, p["ln2_g"], p["ln2_b"], residual=x1)
    return x2.reshape(B, S, H)


def electra_qa_forward(params, input_ids, attention_mask, token_type_ids):
    B, S = input_ids.shape
    H = params["word_emb"].shape[1]

    # Embeddings (gathers are glue in plain JAX), then Pallas LayerNorm -> bf16 acts.
    emb = (params["word_emb"][input_ids]
           + params["pos_emb"][jnp.arange(S)][None, :, :]
           + params["type_emb"][token_type_ids])
    x = pallas_layernorm(emb.reshape(B * S, H),
                         params["emb_ln_g"], params["emb_ln_b"]).reshape(B, S, H)

    # Additive attention-mask bias, BERT/Electra style.
    mask_bias = ((1.0 - attention_mask.astype(jnp.float32)) * -10000.0).reshape(B, 1, S)

    for layer in params["layers"]:
        x = encoder_layer(layer, x, mask_bias, params["n_heads"])

    # qa_outputs Linear(hidden -> L_max), f32 logits, reshape to (B, S * L_max)
    logits = pallas_linear(x.reshape(B * S, H), params["qa_w"], params["qa_b"],
                           out_dtype=jnp.float32)
    l_max = params["qa_w"].shape[1]
    return logits.reshape(B, S * l_max)


# ----------------------------------------------------------------------------
if __name__ == "__main__":
    # Small, shape-consistent config (Electra-large would be H=1024, 24 layers, L_max=512).
    B, S = 2, 8
    HIDDEN, N_HEADS, FFN, N_LAYERS = 32, 4, 64, 2
    VOCAB, MAX_POS, N_TYPES, L_MAX = 100, 64, 2, 16

    key = jax.random.PRNGKey(0)
    kp, ki, kt = jax.random.split(key, 3)

    params = init_params(kp, vocab=VOCAB, max_pos=MAX_POS, n_types=N_TYPES,
                         hidden=HIDDEN, n_layers=N_LAYERS, n_heads=N_HEADS,
                         ffn=FFN, l_max=L_MAX)

    input_ids = jax.random.randint(ki, (B, S), 0, VOCAB, dtype=jnp.int32)
    attention_mask = jnp.concatenate(
        [jnp.ones((B, S - 2), jnp.int32), jnp.zeros((B, 2), jnp.int32)], axis=1)
    token_type_ids = jax.random.randint(kt, (B, S), 0, N_TYPES, dtype=jnp.int32)

    fwd = jax.jit(lambda ids, am, tt: electra_qa_forward(params, ids, am, tt))
    out = fwd(input_ids, attention_mask, token_type_ids)
    out = jax.block_until_ready(out)
    assert out.shape == (B, S * L_MAX)
    print("KERNEL_OK")
</pallas_src>

<mosaic_0001>
module attributes {stable_mosaic.version = 11 : i64} {
  func.func @_linear_kernel(%arg0: i32, %arg1: i32, %arg2: i32, %arg3: memref<16x32xbf16, #tpu.memory_space<vmem>>, %arg4: memref<32x96xbf16, #tpu.memory_space<vmem>>, %arg5: memref<1x96xf32, #tpu.memory_space<vmem>>, %arg6: memref<16x96xbf16, #tpu.memory_space<vmem>>, %arg7: memref<16x96xf32, #tpu.memory_space<vmem>>) attributes {dimension_semantics = [#tpu.dimension_semantics<parallel>, #tpu.dimension_semantics<parallel>, #tpu.dimension_semantics<arbitrary>], iteration_bounds = array<i64: 1, 1, 1>, scalar_prefetch = 0 : i64, scratch_operands = 1 : i64, tpu.core_type = #tpu.core_type<tc>, window_params = [{transform_indices = @transform_0, window_bounds = array<i64: 16, 32>}, {transform_indices = @transform_1, window_bounds = array<i64: 32, 96>}, {transform_indices = @transform_2, window_bounds = array<i64: 1, 96>}, {transform_indices = @transform_3, window_bounds = array<i64: 16, 96>}]} {
    %c0_i32 = arith.constant 0 : i32
    %0 = arith.cmpi eq, %arg2, %c0_i32 : i32
    %1 = arith.extui %0 : i1 to i32
    %c0_i32_0 = arith.constant 0 : i32
    %2 = arith.cmpi ne, %1, %c0_i32_0 : i32
    scf.if %2 {
      %cst_10 = arith.constant 0.000000e+00 : f32
      %12 = vector.broadcast %cst_10 : f32 to vector<16x96xf32>
      %c0_11 = arith.constant 0 : index
      %c0_12 = arith.constant 0 : index
      %13 = vector.load %arg7[%c0_11, %c0_12] : memref<16x96xf32, #tpu.memory_space<vmem>>, vector<16x96xf32>
      tpu.vector_store %arg7[%c0_11, %c0_12], %12 {strides = array<i32>} : memref<16x96xf32, #tpu.memory_space<vmem>>, vector<16x96xf32>,
    } else {
    }
    %c0 = arith.constant 0 : index
    %c0_1 = arith.constant 0 : index
    %3 = vector.load %arg7[%c0, %c0_1] : memref<16x96xf32, #tpu.memory_space<vmem>>, vector<16x96xf32>
    %c0_2 = arith.constant 0 : index
    %c0_3 = arith.constant 0 : index
    %4 = vector.load %arg3[%c0_2, %c0_3] : memref<16x32xbf16, #tpu.memory_space<vmem>>, vector<16x32xbf16>
    %c0_4 = arith.constant 0 : index
    %c0_5 = arith.constant 0 : index
    %5 = vector.load %arg4[%c0_4, %c0_5] : memref<32x96xbf16, #tpu.memory_space<vmem>>, vector<32x96xbf16>
    %cst = arith.constant dense<0.000000e+00> : vector<16x96xf32>
    %6 = tpu.matmul %4, %5, %cst {dimension_numbers = #tpu.dot_dimension_numbers<[1], [0], [0], [1], [0, 0, 1, 1], [], []>} : vector<16x32xbf16>, vector<32x96xbf16>, vector<16x96xf32> -> vector<16x96xf32>
    %7 = arith.addf %3, %6 : vector<16x96xf32>
    %c0_6 = arith.constant 0 : index
    %c0_7 = arith.constant 0 : index
    %8 = vector.load %arg7[%c0_6, %c0_7] : memref<16x96xf32, #tpu.memory_space<vmem>>, vector<16x96xf32>
    tpu.vector_store %arg7[%c0_6, %c0_7], %7 {strides = array<i32>} : memref<16x96xf32, #tpu.memory_space<vmem>>, vector<16x96xf32>,
    %c0_i32_8 = arith.constant 0 : i32
    %9 = arith.cmpi eq, %arg2, %c0_i32_8 : i32
    %10 = arith.extui %9 : i1 to i32
    %c0_i32_9 = arith.constant 0 : i32
    %11 = arith.cmpi ne, %10, %c0_i32_9 : i32
    scf.if %11 {
      %c0_10 = arith.constant 0 : index
      %c0_11 = arith.constant 0 : index
      %12 = vector.load %arg7[%c0_10, %c0_11] : memref<16x96xf32, #tpu.memory_space<vmem>>, vector<16x96xf32>
      %c0_12 = arith.constant 0 : index
      %c0_13 = arith.constant 0 : index
      %13 = vector.load %arg5[%c0_12, %c0_13] : memref<1x96xf32, #tpu.memory_space<vmem>>, vector<1x96xf32>
      %14 = vector.broadcast %13 : vector<1x96xf32> to vector<16x96xf32>
      %15 = arith.addf %12, %14 : vector<16x96xf32>
      %16 = arith.truncf %15 : vector<16x96xf32> to vector<16x96xbf16>
      %c0_14 = arith.constant 0 : index
      %c0_15 = arith.constant 0 : index
      %17 = vector.load %arg6[%c0_14, %c0_15] : memref<16x96xbf16, #tpu.memory_space<vmem>>, vector<16x96xbf16>
      tpu.vector_store %arg6[%c0_14, %c0_15], %16 {strides = array<i32>} : memref<16x96xbf16, #tpu.memory_space<vmem>>, vector<16x96xbf16>,
    } else {
    }
    return
  }
  func.func @transform_0(%arg0: i32, %arg1: i32, %arg2: i32) -> (i32, i32) {
    %c0_i32 = arith.constant 0 : i32
    return %arg0, %arg2 : i32, i32
  }
  func.func @transform_1(%arg0: i32, %arg1: i32, %arg2: i32) -> (i32, i32) {
    %c0_i32 = arith.constant 0 : i32
    return %arg2, %arg1 : i32, i32
  }
  func.func @transform_2(%arg0: i32, %arg1: i32, %arg2: i32) -> (i32, i32) {
    %c0_i32 = arith.constant 0 : i32
    %c0_i32_0 = arith.constant 0 : i32
    return %c0_i32, %arg1 : i32, i32
  }
  func.func @transform_3(%arg0: i32, %arg1: i32, %arg2: i32) -> (i32, i32) {
    %c0_i32 = arith.constant 0 : i32
    return %arg0, %arg1 : i32, i32
  }
}

module attributes {stable_mosaic.version = 11 : i64} {
  func.func @_attn_kernel(%arg0: i32, %arg1: i32, %arg2: memref<1x8x32xbf16, #tpu.memory_space<vmem>>, %arg3: memref<1x8x32xbf16, #tpu.memory_space<vmem>>, %arg4: memref<1x8x32xbf16, #tpu.memory_space<vmem>>, %arg5: memref<1x1x8xf32, #tpu.memory_space<vmem>>, %arg6: memref<1x8x32xbf16, #tpu.memory_space<vmem>>) attributes {dimension_semantics = [#tpu.dimension_semantics<parallel>, #tpu.dimension_semantics<parallel>], iteration_bounds = array<i64: 2, 1>, scalar_prefetch = 0 : i64, scratch_operands = 0 : i64, tpu.core_type = #tpu.core_type<tc>, window_params = [{transform_indices = @transform_0, window_bounds = array<i64: 1, 8, 32>}, {transform_indices = @transform_1, window_bounds = array<i64: 1, 8, 32>}, {transform_indices = @transform_2, window_bounds = array<i64: 1, 8, 32>}, {transform_indices = @transform_3, window_bounds = array<i64: 1, 1, 8>}, {transform_indices = @transform_4, window_bounds = array<i64: 1, 8, 32>}]} {
    %c0 = arith.constant 0 : index
    %c0_0 = arith.constant 0 : index
    %c0_1 = arith.constant 0 : index
    %0 = vector.load %arg5[%c0, %c0_0, %c0_1] : memref<1x1x8xf32, #tpu.memory_space<vmem>>, vector<1x1x8xf32>
    %1 = vector.shape_cast %0 : vector<1x1x8xf32> to vector<1x8xf32>
    %c0_2 = arith.constant 0 : index
    %c0_3 = arith.constant 0 : index
    %c0_4 = arith.constant 0 : index
    %2 = vector.load %arg2[%c0_2, %c0_3, %c0_4] : memref<1x8x32xbf16, #tpu.memory_space<vmem>>, vector<1x8x8xbf16>
    %3 = vector.shape_cast %2 : vector<1x8x8xbf16> to vector<8x8xbf16>
    %cst = arith.constant 3.535160e-01 : bf16
    %4 = vector.broadcast %cst : bf16 to vector<8x8xbf16>
    %5 = arith.mulf %3, %4 : vector<8x8xbf16>
    %c0_5 = arith.constant 0 : index
    %c0_6 = arith.constant 0 : index
    %c0_7 = arith.constant 0 : index
    %6 = vector.load %arg3[%c0_5, %c0_6, %c0_7] : memref<1x8x32xbf16, #tpu.memory_space<vmem>>, vector<1x8x8xbf16>
    %7 = vector.shape_cast %6 : vector<1x8x8xbf16> to vector<8x8xbf16>
    %c0_8 = arith.constant 0 : index
    %c0_9 = arith.constant 0 : index
    %c0_10 = arith.constant 0 : index
    %8 = vector.load %arg4[%c0_8, %c0_9, %c0_10] : memref<1x8x32xbf16, #tpu.memory_space<vmem>>, vector<1x8x8xbf16>
    %9 = vector.shape_cast %8 : vector<1x8x8xbf16> to vector<8x8xbf16>
    %cst_11 = arith.constant dense<0.000000e+00> : vector<8x8xf32>
    %10 = tpu.matmul %5, %7, %cst_11 {dimension_numbers = #tpu.dot_dimension_numbers<[1], [1], [0], [0], [0, 0, 1, 0], [], []>} : vector<8x8xbf16>, vector<8x8xbf16>, vector<8x8xf32> -> vector<8x8xf32>
    %11 = vector.broadcast %1 : vector<1x8xf32> to vector<8x8xf32>
    %12 = arith.addf %10, %11 : vector<8x8xf32>
    %cst_12 = arith.constant dense<0xFF800000> : vector<8xf32>
    %13 = vector.multi_reduction <maximumf>, %12, %cst_12 [1] : vector<8x8xf32> to vector<8xf32>
    %14 = vector.shape_cast %13 : vector<8xf32> to vector<8x1xf32>
    %15 = vector.broadcast %14 : vector<8x1xf32> to vector<8x8xf32>
    %16 = arith.subf %12, %15 : vector<8x8xf32>
    %17 = math.exp %16 : vector<8x8xf32>
    %cst_13 = arith.constant dense<0.000000e+00> : vector<8xf32>
    %18 = vector.multi_reduction <add>, %17, %cst_13 [1] : vector<8x8xf32> to vector<8xf32>
    %19 = vector.shape_cast %18 : vector<8xf32> to vector<8x1xf32>
    %20 = tpu.reciprocal %19 {approx = true} : vector<8x1xf32> -> vector<8x1xf32>
    %21 = vector.broadcast %20 : vector<8x1xf32> to vector<8x8xf32>
    %22 = arith.mulf %17, %21 : vector<8x8xf32>
    %23 = arith.truncf %22 : vector<8x8xf32> to vector<8x8xbf16>
    %cst_14 = arith.constant dense<0.000000e+00> : vector<8x8xf32>
    %24 = tpu.matmul %23, %9, %cst_14 {dimension_numbers = #tpu.dot_dimension_numbers<[1], [0], [0], [1], [0, 0, 1, 1], [], []>} : vector<8x8xbf16>, vector<8x8xbf16>, vector<8x8xf32> -> vector<8x8xf32>
    %25 = arith.truncf %24 : vector<8x8xf32> to vector<8x8xbf16>
    %c0_15 = arith.constant 0 : index
    %c0_16 = arith.constant 0 : index
    %c0_17 = arith.constant 0 : index
    %26 = vector.load %arg6[%c0_15, %c0_16, %c0_17] : memref<1x8x32xbf16, #tpu.memory_space<vmem>>, vector<1x8x8xbf16>
    %27 = vector.shape_cast %26 : vector<1x8x8xbf16> to vector<8x8xbf16>
    %28 = vector.shape_cast %25 : vector<8x8xbf16> to vector<1x8x8xbf16>
    tpu.vector_store %arg6[%c0_15, %c0_16, %c0_17], %28 {strides = array<i32>} : memref<1x8x32xbf16, #tpu.memory_space<vmem>>, vector<1x8x8xbf16>,
    %c0_18 = arith.constant 0 : index
    %c0_19 = arith.constant 0 : index
    %c8 = arith.constant 8 : index
    %29 = vector.load %arg2[%c0_18, %c0_19, %c8] : memref<1x8x32xbf16, #tpu.memory_space<vmem>>, vector<1x8x8xbf16>
    %30 = vector.shape_cast %29 : vector<1x8x8xbf16> to vector<8x8xbf16>
    %cst_20 = arith.constant 3.535160e-01 : bf16
    %31 = vector.broadcast %cst_20 : bf16 to vector<8x8xbf16>
    %32 = arith.mulf %30, %31 : vector<8x8xbf16>
    %c0_21 = arith.constant 0 : index
    %c0_22 = arith.constant 0 : index
    %c8_23 = arith.constant 8 : index
    %33 = vector.load %arg3[%c0_21, %c0_22, %c8_23] : memref<1x8x32xbf16, #tpu.memory_space<vmem>>, vector<1x8x8xbf16>
    %34 = vector.shape_cast %33 : vector<1x8x8xbf16> to vector<8x8xbf16>
    %c0_24 = arith.constant 0 : index
    %c0_25 = arith.constant 0 : index
    %c8_26 = arith.constant 8 : index
    %35 = vector.load %arg4[%c0_24, %c0_25, %c8_26] : memref<1x8x32xbf16, #tpu.memory_space<vmem>>, vector<1x8x8xbf16>
    %36 = vector.shape_cast %35 : vector<1x8x8xbf16> to vector<8x8xbf16>
    %cst_27 = arith.constant dense<0.000000e+00> : vector<8x8xf32>
    %37 = tpu.matmul %32, %34, %cst_27 {dimension_numbers = #tpu.dot_dimension_numbers<[1], [1], [0], [0], [0, 0, 1, 0], [], []>} : vector<8x8xbf16>, vector<8x8xbf16>, vector<8x8xf32> -> vector<8x8xf32>
    %38 = vector.broadcast %1 : vector<1x8xf32> to vector<8x8xf32>
    %39 = arith.addf %37, %38 : vector<8x8xf32>
    %cst_28 = arith.constant dense<0xFF800000> : vector<8xf32>
    %40 = vector.multi_reduction <maximumf>, %39, %cst_28 [1] : vector<8x8xf32> to vector<8xf32>
    %41 = vector.shape_cast %40 : vector<8xf32> to vector<8x1xf32>
    %42 = vector.broadcast %41 : vector<8x1xf32> to vector<8x8xf32>
    %43 = arith.subf %39, %42 : vector<8x8xf32>
    %44 = math.exp %43 : vector<8x8xf32>
    %cst_29 = arith.constant dense<0.000000e+00> : vector<8xf32>
    %45 = vector.multi_reduction <add>, %44, %cst_29 [1] : vector<8x8xf32> to vector<8xf32>
    %46 = vector.shape_cast %45 : vector<8xf32> to vector<8x1xf32>
    %47 = tpu.reciprocal %46 {approx = true} : vector<8x1xf32> -> vector<8x1xf32>
    %48 = vector.broadcast %47 : vector<8x1xf32> to vector<8x8xf32>
    %49 = arith.mulf %44, %48 : vector<8x8xf32>
    %50 = arith.truncf %49 : vector<8x8xf32> to vector<8x8xbf16>
    %cst_30 = arith.constant dense<0.000000e+00> : vector<8x8xf32>
    %51 = tpu.matmul %50, %36, %cst_30 {dimension_numbers = #tpu.dot_dimension_numbers<[1], [0], [0], [1], [0, 0, 1, 1], [], []>} : vector<8x8xbf16>, vector<8x8xbf16>, vector<8x8xf32> -> vector<8x8xf32>
    %52 = arith.truncf %51 : vector<8x8xf32> to vector<8x8xbf16>
    %c0_31 = arith.constant 0 : index
    %c0_32 = arith.constant 0 : index
    %c8_33 = arith.constant 8 : index
    %53 = vector.load %arg6[%c0_31, %c0_32, %c8_33] : memref<1x8x32xbf16, #tpu.memory_space<vmem>>, vector<1x8x8xbf16>
    %54 = vector.shape_cast %53 : vector<1x8x8xbf16> to vector<8x8xbf16>
    %55 = vector.shape_cast %52 : vector<8x8xbf16> to vector<1x8x8xbf16>
    tpu.vector_store %arg6[%c0_31, %c0_32, %c8_33], %55 {strides = array<i32>} : memref<1x8x32xbf16, #tpu.memory_space<vmem>>, vector<1x8x8xbf16>,
    %c0_34 = arith.constant 0 : index
    %c0_35 = arith.constant 0 : index
    %c16 = arith.constant 16 : index
    %56 = vector.load %arg2[%c0_34, %c0_35, %c16] : memref<1x8x32xbf16, #tpu.memory_space<vmem>>, vector<1x8x8xbf16>
    %57 = vector.shape_cast %56 : vector<1x8x8xbf16> to vector<8x8xbf16>
    %cst_36 = arith.constant 3.535160e-01 : bf16
    %58 = vector.broadcast %cst_36 : bf16 to vector<8x8xbf16>
    %59 = arith.mulf %57, %58 : vector<8x8xbf16>
    %c0_37 = arith.constant 0 : index
    %c0_38 = arith.constant 0 : index
    %c16_39 = arith.constant 16 : index
    %60 = vector.load %arg3[%c0_37, %c0_38, %c16_39] : memref<1x8x32xbf16, #tpu.memory_space<vmem>>, vector<1x8x8xbf16>
    %61 = vector.shape_cast %60 : vector<1x8x8xbf16> to vector<8x8xbf16>
    %c0_40 = arith.constant 0 : index
    %c0_41 = arith.constant 0 : index
    %c16_42 = arith.constant 16 : index
    %62 = vector.load %arg4[%c0_40, %c0_41, %c16_42] : memref<1x8x32xbf16, #tpu.memory_space<vmem>>, vector<1x8x8xbf16>
    %63 = vector.shape_cast %62 : vector<1x8x8xbf16> to vector<8x8xbf16>
    %cst_43 = arith.constant dense<0.000000e+00> : vector<8x8xf32>
    %64 = tpu.matmul %59, %61, %cst_43 {dimension_numbers = #tpu.dot_dimension_numbers<[1], [1], [0], [0], [0, 0, 1, 0], [], []>} : vector<8x8xbf16>, vector<8x8xbf16>, vector<8x8xf32> -> vector<8x8xf32>
    %65 = vector.broadcast %1 : vector<1x8xf32> to vector<8x8xf32>
    %66 = arith.addf %64, %65 : vector<8x8xf32>
    %cst_44 = arith.constant dense<0xFF800000> : vector<8xf32>
    %67 = vector.multi_reduction <maximumf>, %66, %cst_44 [1] : vector<8x8xf32> to vector<8xf32>
    %68 = vector.shape_cast %67 : vector<8xf32> to vector<8x1xf32>
    %69 = vector.broadcast %68 : vector<8x1xf32> to vector<8x8xf32>
    %70 = arith.subf %66, %69 : vector<8x8xf32>
    %71 = math.exp %70 : vector<8x8xf32>
    %cst_45 = arith.constant dense<0.000000e+00> : vector<8xf32>
    %72 = vector.multi_reduction <add>, %71, %cst_45 [1] : vector<8x8xf32> to vector<8xf32>
    %73 = vector.shape_cast %72 : vector<8xf32> to vector<8x1xf32>
    %74 = tpu.reciprocal %73 {approx = true} : vector<8x1xf32> -> vector<8x1xf32>
    %75 = vector.broadcast %74 : vector<8x1xf32> to vector<8x8xf32>
    %76 = arith.mulf %71, %75 : vector<8x8xf32>
    %77 = arith.truncf %76 : vector<8x8xf32> to vector<8x8xbf16>
    %cst_46 = arith.constant dense<0.000000e+00> : vector<8x8xf32>
    %78 = tpu.matmul %77, %63, %cst_46 {dimension_numbers = #tpu.dot_dimension_numbers<[1], [0], [0], [1], [0, 0, 1, 1], [], []>} : vector<8x8xbf16>, vector<8x8xbf16>, vector<8x8xf32> -> vector<8x8xf32>
    %79 = arith.truncf %78 : vector<8x8xf32> to vector<8x8xbf16>
    %c0_47 = arith.constant 0 : index
    %c0_48 = arith.constant 0 : index
    %c16_49 = arith.constant 16 : index
    %80 = vector.load %arg6[%c0_47, %c0_48, %c16_49] : memref<1x8x32xbf16, #tpu.memory_space<vmem>>, vector<1x8x8xbf16>
    %81 = vector.shape_cast %80 : vector<1x8x8xbf16> to vector<8x8xbf16>
    %82 = vector.shape_cast %79 : vector<8x8xbf16> to vector<1x8x8xbf16>
    tpu.vector_store %arg6[%c0_47, %c0_48, %c16_49], %82 {strides = array<i32>} : memref<1x8x32xbf16, #tpu.memory_space<vmem>>, vector<1x8x8xbf16>,
    %c0_50 = arith.constant 0 : index
    %c0_51 = arith.constant 0 : index
    %c24 = arith.constant 24 : index
    %83 = vector.load %arg2[%c0_50, %c0_51, %c24] : memref<1x8x32xbf16, #tpu.memory_space<vmem>>, vector<1x8x8xbf16>
    %84 = vector.shape_cast %83 : vector<1x8x8xbf16> to vector<8x8xbf16>
    %cst_52 = arith.constant 3.535160e-01 : bf16
    %85 = vector.broadcast %cst_52 : bf16 to vector<8x8xbf16>
    %86 = arith.mulf %84, %85 : vector<8x8xbf16>
    %c0_53 = arith.constant 0 : index
    %c0_54 = arith.constant 0 : index
    %c24_55 = arith.constant 24 : index
    %87 = vector.load %arg3[%c0_53, %c0_54, %c24_55] : memref<1x8x32xbf16, #tpu.memory_space<vmem>>, vector<1x8x8xbf16>
    %88 = vector.shape_cast %87 : vector<1x8x8xbf16> to vector<8x8xbf16>
    %c0_56 = arith.constant 0 : index
    %c0_57 = arith.constant 0 : index
    %c24_58 = arith.constant 24 : index
    %89 = vector.load %arg4[%c0_56, %c0_57, %c24_58] : memref<1x8x32xbf16, #tpu.memory_space<vmem>>, vector<1x8x8xbf16>
    %90 = vector.shape_cast %89 : vector<1x8x8xbf16> to vector<8x8xbf16>
    %cst_59 = arith.constant dense<0.000000e+00> : vector<8x8xf32>
    %91 = tpu.matmul %86, %88, %cst_59 {dimension_numbers = #tpu.dot_dimension_numbers<[1], [1], [0], [0], [0, 0, 1, 0], [], []>} : vector<8x8xbf16>, vector<8x8xbf16>, vector<8x8xf32> -> vector<8x8xf32>
    %92 = vector.broadcast %1 : vector<1x8xf32> to vector<8x8xf32>
    %93 = arith.addf %91, %92 : vector<8x8xf32>
    %cst_60 = arith.constant dense<0xFF800000> : vector<8xf32>
    %94 = vector.multi_reduction <maximumf>, %93, %cst_60 [1] : vector<8x8xf32> to vector<8xf32>
    %95 = vector.shape_cast %94 : vector<8xf32> to vector<8x1xf32>
    %96 = vector.broadcast %95 : vector<8x1xf32> to vector<8x8xf32>
    %97 = arith.subf %93, %96 : vector<8x8xf32>
    %98 = math.exp %97 : vector<8x8xf32>
    %cst_61 = arith.constant dense<0.000000e+00> : vector<8xf32>
    %99 = vector.multi_reduction <add>, %98, %cst_61 [1] : vector<8x8xf32> to vector<8xf32>
    %100 = vector.shape_cast %99 : vector<8xf32> to vector<8x1xf32>
    %101 = tpu.reciprocal %100 {approx = true} : vector<8x1xf32> -> vector<8x1xf32>
    %102 = vector.broadcast %101 : vector<8x1xf32> to vector<8x8xf32>
    %103 = arith.mulf %98, %102 : vector<8x8xf32>
    %104 = arith.truncf %103 : vector<8x8xf32> to vector<8x8xbf16>
    %cst_62 = arith.constant dense<0.000000e+00> : vector<8x8xf32>
    %105 = tpu.matmul %104, %90, %cst_62 {dimension_numbers = #tpu.dot_dimension_numbers<[1], [0], [0], [1], [0, 0, 1, 1], [], []>} : vector<8x8xbf16>, vector<8x8xbf16>, vector<8x8xf32> -> vector<8x8xf32>
    %106 = arith.truncf %105 : vector<8x8xf32> to vector<8x8xbf16>
    %c0_63 = arith.constant 0 : index
    %c0_64 = arith.constant 0 : index
    %c24_65 = arith.constant 24 : index
    %107 = vector.load %arg6[%c0_63, %c0_64, %c24_65] : memref<1x8x32xbf16, #tpu.memory_space<vmem>>, vector<1x8x8xbf16>
    %108 = vector.shape_cast %107 : vector<1x8x8xbf16> to vector<8x8xbf16>
    %109 = vector.shape_cast %106 : vector<8x8xbf16> to vector<1x8x8xbf16>
    tpu.vector_store %arg6[%c0_63, %c0_64, %c24_65], %109 {strides = array<i32>} : memref<1x8x32xbf16, #tpu.memory_space<vmem>>, vector<1x8x8xbf16>,
    return
  }
  func.func @transform_0(%arg0: i32, %arg1: i32) -> (i32, i32, i32) {
    %c0_i32 = arith.constant 0 : i32
    %c0_i32_0 = arith.constant 0 : i32
    return %arg0, %c0_i32, %arg1 : i32, i32, i32
  }
  func.func @transform_1(%arg0: i32, %arg1: i32) -> (i32, i32, i32) {
    %c0_i32 = arith.constant 0 : i32
    %c0_i32_0 = arith.constant 0 : i32
    return %arg0, %c0_i32, %arg1 : i32, i32, i32
  }
  func.func @transform_2(%arg0: i32, %arg1: i32) -> (i32, i32, i32) {
    %c0_i32 = arith.constant 0 : i32
    %c0_i32_0 = arith.constant 0 : i32
    return %arg0, %c0_i32, %arg1 : i32, i32, i32
  }
  func.func @transform_3(%arg0: i32, %arg1: i32) -> (i32, i32, i32) {
    %c0_i32 = arith.constant 0 : i32
    %c0_i32_0 = arith.constant 0 : i32
    %c0_i32_1 = arith.constant 0 : i32
    return %arg0, %c0_i32, %c0_i32_0 : i32, i32, i32
  }
  func.func @transform_4(%arg0: i32, %arg1: i32) -> (i32, i32, i32) {
    %c0_i32 = arith.constant 0 : i32
    %c0_i32_0 = arith.constant 0 : i32
    return %arg0, %c0_i32, %arg1 : i32, i32, i32
  }
}

module attributes {stable_mosaic.version = 11 : i64} {
  func.func @_layernorm_kernel(%arg0: i32, %arg1: memref<16x32xf32, #tpu.memory_space<vmem>>, %arg2: memref<1x32xf32, #tpu.memory_space<vmem>>, %arg3: memref<1x32xf32, #tpu.memory_space<vmem>>, %arg4: memref<16x32xbf16, #tpu.memory_space<vmem>>) attributes {dimension_semantics = [#tpu.dimension_semantics<parallel>], iteration_bounds = array<i64: 1>, scalar_prefetch = 0 : i64, scratch_operands = 0 : i64, tpu.core_type = #tpu.core_type<tc>, window_params = [{transform_indices = @transform_0, window_bounds = array<i64: 16, 32>}, {pipeline_mode = #tpu.pipeline_mode<synchronous>, transform_indices = @transform_1, window_bounds = array<i64: 1, 32>}, {pipeline_mode = #tpu.pipeline_mode<synchronous>, transform_indices = @transform_2, window_bounds = array<i64: 1, 32>}, {transform_indices = @transform_3, window_bounds = array<i64: 16, 32>}]} {
    %c0 = arith.constant 0 : index
    %c0_0 = arith.constant 0 : index
    %0 = vector.load %arg1[%c0, %c0_0] : memref<16x32xf32, #tpu.memory_space<vmem>>, vector<16x32xf32>
    %cst = arith.constant dense<0.000000e+00> : vector<16xf32>
    %1 = vector.multi_reduction <add>, %0, %cst [1] : vector<16x32xf32> to vector<16xf32>
    %2 = vector.shape_cast %1 : vector<16xf32> to vector<16x1xf32>
    %cst_1 = arith.constant 3.200000e+01 : f32
    %3 = vector.broadcast %cst_1 : f32 to vector<16x1xf32>
    %4 = arith.divf %2, %3 : vector<16x1xf32>
    %5 = vector.broadcast %4 : vector<16x1xf32> to vector<16x32xf32>
    %6 = arith.subf %0, %5 : vector<16x32xf32>
    %7 = arith.mulf %6, %6 : vector<16x32xf32>
    %cst_2 = arith.constant dense<0.000000e+00> : vector<16xf32>
    %8 = vector.multi_reduction <add>, %7, %cst_2 [1] : vector<16x32xf32> to vector<16xf32>
    %9 = vector.shape_cast %8 : vector<16xf32> to vector<16x1xf32>
    %cst_3 = arith.constant 3.200000e+01 : f32
    %10 = vector.broadcast %cst_3 : f32 to vector<16x1xf32>
    %11 = arith.divf %9, %10 : vector<16x1xf32>
    %12 = vector.broadcast %4 : vector<16x1xf32> to vector<16x32xf32>
    %13 = arith.subf %0, %12 : vector<16x32xf32>
    %cst_4 = arith.constant 9.99999996E-13 : f32
    %14 = vector.broadcast %cst_4 : f32 to vector<16x1xf32>
    %15 = arith.addf %11, %14 : vector<16x1xf32>
    %16 = math.rsqrt %15 : vector<16x1xf32>
    %17 = vector.broadcast %16 : vector<16x1xf32> to vector<16x32xf32>
    %18 = arith.mulf %13, %17 : vector<16x32xf32>
    %c0_5 = arith.constant 0 : index
    %c0_6 = arith.constant 0 : index
    %19 = vector.load %arg2[%c0_5, %c0_6] : memref<1x32xf32, #tpu.memory_space<vmem>>, vector<1x32xf32>
    %20 = vector.broadcast %19 : vector<1x32xf32> to vector<16x32xf32>
    %21 = arith.mulf %18, %20 : vector<16x32xf32>
    %c0_7 = arith.constant 0 : index
    %c0_8 = arith.constant 0 : index
    %22 = vector.load %arg3[%c0_7, %c0_8] : memref<1x32xf32, #tpu.memory_space<vmem>>, vector<1x32xf32>
    %23 = vector.broadcast %22 : vector<1x32xf32> to vector<16x32xf32>
    %24 = arith.addf %21, %23 : vector<16x32xf32>
    %25 = arith.truncf %24 : vector<16x32xf32> to vector<16x32xbf16>
    %c0_9 = arith.constant 0 : index
    %c0_10 = arith.constant 0 : index
    %26 = vector.load %arg4[%c0_9, %c0_10] : memref<16x32xbf16, #tpu.memory_space<vmem>>, vector<16x32xbf16>
    tpu.vector_store %arg4[%c0_9, %c0_10], %25 {strides = array<i32>} : memref<16x32xbf16, #tpu.memory_space<vmem>>, vector<16x32xbf16>,
    return
  }
  func.func @transform_0(%arg0: i32) -> (i32, i32) {
    %c0_i32 = arith.constant 0 : i32
    %c0_i32_0 = arith.constant 0 : i32
    return %arg0, %c0_i32 : i32, i32
  }
  func.func @transform_1(%arg0: i32) -> (i32, i32) {
    %c0_i32 = arith.constant 0 : i32
    %c0_i32_0 = arith.constant 0 : i32
    %c0_i32_1 = arith.constant 0 : i32
    return %c0_i32, %c0_i32_0 : i32, i32
  }
  func.func @transform_2(%arg0: i32) -> (i32, i32) {
    %c0_i32 = arith.constant 0 : i32
    %c0_i32_0 = arith.constant 0 : i32
    %c0_i32_1 = arith.constant 0 : i32
    return %c0_i32, %c0_i32_0 : i32, i32
  }
  func.func @transform_3(%arg0: i32) -> (i32, i32) {
    %c0_i32 = arith.constant 0 : i32
    %c0_i32_0 = arith.constant 0 : i32
    return %arg0, %c0_i32 : i32, i32
  }
}

module attributes {stable_mosaic.version = 11 : i64} {
  func.func @_linear_kernel(%arg0: i32, %arg1: i32, %arg2: i32, %arg3: memref<16x32xbf16, #tpu.memory_space<vmem>>, %arg4: memref<32x32xbf16, #tpu.memory_space<vmem>>, %arg5: memref<1x32xf32, #tpu.memory_space<vmem>>, %arg6: memref<16x32xbf16, #tpu.memory_space<vmem>>, %arg7: memref<16x32xf32, #tpu.memory_space<vmem>>) attributes {dimension_semantics = [#tpu.dimension_semantics<parallel>, #tpu.dimension_semantics<parallel>, #tpu.dimension_semantics<arbitrary>], iteration_bounds = array<i64: 1, 1, 1>, scalar_prefetch = 0 : i64, scratch_operands = 1 : i64, tpu.core_type = #tpu.core_type<tc>, window_params = [{transform_indices = @transform_0, window_bounds = array<i64: 16, 32>}, {transform_indices = @transform_1, window_bounds = array<i64: 32, 32>}, {transform_indices = @transform_2, window_bounds = array<i64: 1, 32>}, {transform_indices = @transform_3, window_bounds = array<i64: 16, 32>}]} {
    %c0_i32 = arith.constant 0 : i32
    %0 = arith.cmpi eq, %arg2, %c0_i32 : i32
    %1 = arith.extui %0 : i1 to i32
    %c0_i32_0 = arith.constant 0 : i32
    %2 = arith.cmpi ne, %1, %c0_i32_0 : i32
    scf.if %2 {
      %cst_10 = arith.constant 0.000000e+00 : f32
      %12 = vector.broadcast %cst_10 : f32 to vector<16x32xf32>
      %c0_11 = arith.constant 0 : index
      %c0_12 = arith.constant 0 : index
      %13 = vector.load %arg7[%c0_11, %c0_12] : memref<16x32xf32, #tpu.memory_space<vmem>>, vector<16x32xf32>
      tpu.vector_store %arg7[%c0_11, %c0_12], %12 {strides = array<i32>} : memref<16x32xf32, #tpu.memory_space<vmem>>, vector<16x32xf32>,
    } else {
    }
    %c0 = arith.constant 0 : index
    %c0_1 = arith.constant 0 : index
    %3 = vector.load %arg7[%c0, %c0_1] : memref<16x32xf32, #tpu.memory_space<vmem>>, vector<16x32xf32>
    %c0_2 = arith.constant 0 : index
    %c0_3 = arith.constant 0 : index
    %4 = vector.load %arg3[%c0_2, %c0_3] : memref<16x32xbf16, #tpu.memory_space<vmem>>, vector<16x32xbf16>
    %c0_4 = arith.constant 0 : index
    %c0_5 = arith.constant 0 : index
    %5 = vector.load %arg4[%c0_4, %c0_5] : memref<32x32xbf16, #tpu.memory_space<vmem>>, vector<32x32xbf16>
    %cst = arith.constant dense<0.000000e+00> : vector<16x32xf32>
    %6 = tpu.matmul %4, %5, %cst {dimension_numbers = #tpu.dot_dimension_numbers<[1], [0], [0], [1], [0, 0, 1, 1], [], []>} : vector<16x32xbf16>, vector<32x32xbf16>, vector<16x32xf32> -> vector<16x32xf32>
    %7 = arith.addf %3, %6 : vector<16x32xf32>
    %c0_6 = arith.constant 0 : index
    %c0_7 = arith.constant 0 : index
    %8 = vector.load %arg7[%c0_6, %c0_7] : memref<16x32xf32, #tpu.memory_space<vmem>>, vector<16x32xf32>
    tpu.vector_store %arg7[%c0_6, %c0_7], %7 {strides = array<i32>} : memref<16x32xf32, #tpu.memory_space<vmem>>, vector<16x32xf32>,
    %c0_i32_8 = arith.constant 0 : i32
    %9 = arith.cmpi eq, %arg2, %c0_i32_8 : i32
    %10 = arith.extui %9 : i1 to i32
    %c0_i32_9 = arith.constant 0 : i32
    %11 = arith.cmpi ne, %10, %c0_i32_9 : i32
    scf.if %11 {
      %c0_10 = arith.constant 0 : index
      %c0_11 = arith.constant 0 : index
      %12 = vector.load %arg7[%c0_10, %c0_11] : memref<16x32xf32, #tpu.memory_space<vmem>>, vector<16x32xf32>
      %c0_12 = arith.constant 0 : index
      %c0_13 = arith.constant 0 : index
      %13 = vector.load %arg5[%c0_12, %c0_13] : memref<1x32xf32, #tpu.memory_space<vmem>>, vector<1x32xf32>
      %14 = vector.broadcast %13 : vector<1x32xf32> to vector<16x32xf32>
      %15 = arith.addf %12, %14 : vector<16x32xf32>
      %16 = arith.truncf %15 : vector<16x32xf32> to vector<16x32xbf16>
      %c0_14 = arith.constant 0 : index
      %c0_15 = arith.constant 0 : index
      %17 = vector.load %arg6[%c0_14, %c0_15] : memref<16x32xbf16, #tpu.memory_space<vmem>>, vector<16x32xbf16>
      tpu.vector_store %arg6[%c0_14, %c0_15], %16 {strides = array<i32>} : memref<16x32xbf16, #tpu.memory_space<vmem>>, vector<16x32xbf16>,
    } else {
    }
    return
  }
  func.func @transform_0(%arg0: i32, %arg1: i32, %arg2: i32) -> (i32, i32) {
    %c0_i32 = arith.constant 0 : i32
    return %arg0, %arg2 : i32, i32
  }
  func.func @transform_1(%arg0: i32, %arg1: i32, %arg2: i32) -> (i32, i32) {
    %c0_i32 = arith.constant 0 : i32
    return %arg2, %arg1 : i32, i32
  }
  func.func @transform_2(%arg0: i32, %arg1: i32, %arg2: i32) -> (i32, i32) {
    %c0_i32 = arith.constant 0 : i32
    %c0_i32_0 = arith.constant 0 : i32
    return %c0_i32, %arg1 : i32, i32
  }
  func.func @transform_3(%arg0: i32, %arg1: i32, %arg2: i32) -> (i32, i32) {
    %c0_i32 = arith.constant 0 : i32
    return %arg0, %arg1 : i32, i32
  }
}

module attributes {stable_mosaic.version = 11 : i64} {
  func.func @_layernorm_kernel(%arg0: i32, %arg1: memref<16x32xbf16, #tpu.memory_space<vmem>>, %arg2: memref<16x32xbf16, #tpu.memory_space<vmem>>, %arg3: memref<1x32xf32, #tpu.memory_space<vmem>>, %arg4: memref<1x32xf32, #tpu.memory_space<vmem>>, %arg5: memref<16x32xbf16, #tpu.memory_space<vmem>>) attributes {dimension_semantics = [#tpu.dimension_semantics<parallel>], iteration_bounds = array<i64: 1>, scalar_prefetch = 0 : i64, scratch_operands = 0 : i64, tpu.core_type = #tpu.core_type<tc>, window_params = [{transform_indices = @transform_0, window_bounds = array<i64: 16, 32>}, {transform_indices = @transform_1, window_bounds = array<i64: 16, 32>}, {pipeline_mode = #tpu.pipeline_mode<synchronous>, transform_indices = @transform_2, window_bounds = array<i64: 1, 32>}, {pipeline_mode = #tpu.pipeline_mode<synchronous>, transform_indices = @transform_3, window_bounds = array<i64: 1, 32>}, {transform_indices = @transform_4, window_bounds = array<i64: 16, 32>}]} {
    %c0 = arith.constant 0 : index
    %c0_0 = arith.constant 0 : index
    %0 = vector.load %arg1[%c0, %c0_0] : memref<16x32xbf16, #tpu.memory_space<vmem>>, vector<16x32xbf16>
    %1 = arith.extf %0 : vector<16x32xbf16> to vector<16x32xf32>
    %c0_1 = arith.constant 0 : index
    %c0_2 = arith.constant 0 : index
    %2 = vector.load %arg2[%c0_1, %c0_2] : memref<16x32xbf16, #tpu.memory_space<vmem>>, vector<16x32xbf16>
    %3 = arith.extf %2 : vector<16x32xbf16> to vector<16x32xf32>
    %4 = arith.addf %1, %3 : vector<16x32xf32>
    %cst = arith.constant dense<0.000000e+00> : vector<16xf32>
    %5 = vector.multi_reduction <add>, %4, %cst [1] : vector<16x32xf32> to vector<16xf32>
    %6 = vector.shape_cast %5 : vector<16xf32> to vector<16x1xf32>
    %cst_3 = arith.constant 3.200000e+01 : f32
    %7 = vector.broadcast %cst_3 : f32 to vector<16x1xf32>
    %8 = arith.divf %6, %7 : vector<16x1xf32>
    %9 = vector.broadcast %8 : vector<16x1xf32> to vector<16x32xf32>
    %10 = arith.subf %4, %9 : vector<16x32xf32>
    %11 = arith.mulf %10, %10 : vector<16x32xf32>
    %cst_4 = arith.constant dense<0.000000e+00> : vector<16xf32>
    %12 = vector.multi_reduction <add>, %11, %cst_4 [1] : vector<16x32xf32> to vector<16xf32>
    %13 = vector.shape_cast %12 : vector<16xf32> to vector<16x1xf32>
    %cst_5 = arith.constant 3.200000e+01 : f32
    %14 = vector.broadcast %cst_5 : f32 to vector<16x1xf32>
    %15 = arith.divf %13, %14 : vector<16x1xf32>
    %16 = vector.broadcast %8 : vector<16x1xf32> to vector<16x32xf32>
    %17 = arith.subf %4, %16 : vector<16x32xf32>
    %cst_6 = arith.constant 9.99999996E-13 : f32
    %18 = vector.broadcast %cst_6 : f32 to vector<16x1xf32>
    %19 = arith.addf %15, %18 : vector<16x1xf32>
    %20 = math.rsqrt %19 : vector<16x1xf32>
    %21 = vector.broadcast %20 : vector<16x1xf32> to vector<16x32xf32>
    %22 = arith.mulf %17, %21 : vector<16x32xf32>
    %c0_7 = arith.constant 0 : index
    %c0_8 = arith.constant 0 : index
    %23 = vector.load %arg3[%c0_7, %c0_8] : memref<1x32xf32, #tpu.memory_space<vmem>>, vector<1x32xf32>
    %24 = vector.broadcast %23 : vector<1x32xf32> to vector<16x32xf32>
    %25 = arith.mulf %22, %24 : vector<16x32xf32>
    %c0_9 = arith.constant 0 : index
    %c0_10 = arith.constant 0 : index
    %26 = vector.load %arg4[%c0_9, %c0_10] : memref<1x32xf32, #tpu.memory_space<vmem>>, vector<1x32xf32>
    %27 = vector.broadcast %26 : vector<1x32xf32> to vector<16x32xf32>
    %28 = arith.addf %25, %27 : vector<16x32xf32>
    %29 = arith.truncf %28 : vector<16x32xf32> to vector<16x32xbf16>
    %c0_11 = arith.constant 0 : index
    %c0_12 = arith.constant 0 : index
    %30 = vector.load %arg5[%c0_11, %c0_12] : memref<16x32xbf16, #tpu.memory_space<vmem>>, vector<16x32xbf16>
    tpu.vector_store %arg5[%c0_11, %c0_12], %29 {strides = array<i32>} : memref<16x32xbf16, #tpu.memory_space<vmem>>, vector<16x32xbf16>,
    return
  }
  func.func @transform_0(%arg0: i32) -> (i32, i32) {
    %c0_i32 = arith.constant 0 : i32
    %c0_i32_0 = arith.constant 0 : i32
    return %arg0, %c0_i32 : i32, i32
  }
  func.func @transform_1(%arg0: i32) -> (i32, i32) {
    %c0_i32 = arith.constant 0 : i32
    %c0_i32_0 = arith.constant 0 : i32
    return %arg0, %c0_i32 : i32, i32
  }
  func.func @transform_2(%arg0: i32) -> (i32, i32) {
    %c0_i32 = arith.constant 0 : i32
    %c0_i32_0 = arith.constant 0 : i32
    %c0_i32_1 = arith.constant 0 : i32
    return %c0_i32, %c0_i32_0 : i32, i32
  }
  func.func @transform_3(%arg0: i32) -> (i32, i32) {
    %c0_i32 = arith.constant 0 : i32
    %c0_i32_0 = arith.constant 0 : i32
    %c0_i32_1 = arith.constant 0 : i32
    return %c0_i32, %c0_i32_0 : i32, i32
  }
  func.func @transform_4(%arg0: i32) -> (i32, i32) {
    %c0_i32 = arith.constant 0 : i32
    %c0_i32_0 = arith.constant 0 : i32
    return %arg0, %c0_i32 : i32, i32
  }
}

module attributes {stable_mosaic.version = 11 : i64} {
  func.func @_linear_kernel(%arg0: i32, %arg1: i32, %arg2: i32, %arg3: memref<16x32xbf16, #tpu.memory_space<vmem>>, %arg4: memref<32x64xbf16, #tpu.memory_space<vmem>>, %arg5: memref<1x64xf32, #tpu.memory_space<vmem>>, %arg6: memref<16x64xbf16, #tpu.memory_space<vmem>>, %arg7: memref<16x64xf32, #tpu.memory_space<vmem>>) attributes {dimension_semantics = [#tpu.dimension_semantics<parallel>, #tpu.dimension_semantics<parallel>, #tpu.dimension_semantics<arbitrary>], iteration_bounds = array<i64: 1, 1, 1>, scalar_prefetch = 0 : i64, scratch_operands = 1 : i64, tpu.core_type = #tpu.core_type<tc>, window_params = [{transform_indices = @transform_0, window_bounds = array<i64: 16, 32>}, {transform_indices = @transform_1, window_bounds = array<i64: 32, 64>}, {transform_indices = @transform_2, window_bounds = array<i64: 1, 64>}, {transform_indices = @transform_3, window_bounds = array<i64: 16, 64>}]} {
    %c0_i32 = arith.constant 0 : i32
    %0 = arith.cmpi eq, %arg2, %c0_i32 : i32
    %1 = arith.extui %0 : i1 to i32
    %c0_i32_0 = arith.constant 0 : i32
    %2 = arith.cmpi ne, %1, %c0_i32_0 : i32
    scf.if %2 {
      %cst_10 = arith.constant 0.000000e+00 : f32
      %12 = vector.broadcast %cst_10 : f32 to vector<16x64xf32>
      %c0_11 = arith.constant 0 : index
      %c0_12 = arith.constant 0 : index
      %13 = vector.load %arg7[%c0_11, %c0_12] : memref<16x64xf32, #tpu.memory_space<vmem>>, vector<16x64xf32>
      tpu.vector_store %arg7[%c0_11, %c0_12], %12 {strides = array<i32>} : memref<16x64xf32, #tpu.memory_space<vmem>>, vector<16x64xf32>,
    } else {
    }
    %c0 = arith.constant 0 : index
    %c0_1 = arith.constant 0 : index
    %3 = vector.load %arg7[%c0, %c0_1] : memref<16x64xf32, #tpu.memory_space<vmem>>, vector<16x64xf32>
    %c0_2 = arith.constant 0 : index
    %c0_3 = arith.constant 0 : index
    %4 = vector.load %arg3[%c0_2, %c0_3] : memref<16x32xbf16, #tpu.memory_space<vmem>>, vector<16x32xbf16>
    %c0_4 = arith.constant 0 : index
    %c0_5 = arith.constant 0 : index
    %5 = vector.load %arg4[%c0_4, %c0_5] : memref<32x64xbf16, #tpu.memory_space<vmem>>, vector<32x64xbf16>
    %cst = arith.constant dense<0.000000e+00> : vector<16x64xf32>
    %6 = tpu.matmul %4, %5, %cst {dimension_numbers = #tpu.dot_dimension_numbers<[1], [0], [0], [1], [0, 0, 1, 1], [], []>} : vector<16x32xbf16>, vector<32x64xbf16>, vector<16x64xf32> -> vector<16x64xf32>
    %7 = arith.addf %3, %6 : vector<16x64xf32>
    %c0_6 = arith.constant 0 : index
    %c0_7 = arith.constant 0 : index
    %8 = vector.load %arg7[%c0_6, %c0_7] : memref<16x64xf32, #tpu.memory_space<vmem>>, vector<16x64xf32>
    tpu.vector_store %arg7[%c0_6, %c0_7], %7 {strides = array<i32>} : memref<16x64xf32, #tpu.memory_space<vmem>>, vector<16x64xf32>,
    %c0_i32_8 = arith.constant 0 : i32
    %9 = arith.cmpi eq, %arg2, %c0_i32_8 : i32
    %10 = arith.extui %9 : i1 to i32
    %c0_i32_9 = arith.constant 0 : i32
    %11 = arith.cmpi ne, %10, %c0_i32_9 : i32
    scf.if %11 {
      %c0_10 = arith.constant 0 : index
      %c0_11 = arith.constant 0 : index
      %12 = vector.load %arg7[%c0_10, %c0_11] : memref<16x64xf32, #tpu.memory_space<vmem>>, vector<16x64xf32>
      %c0_12 = arith.constant 0 : index
      %c0_13 = arith.constant 0 : index
      %13 = vector.load %arg5[%c0_12, %c0_13] : memref<1x64xf32, #tpu.memory_space<vmem>>, vector<1x64xf32>
      %14 = vector.broadcast %13 : vector<1x64xf32> to vector<16x64xf32>
      %15 = arith.addf %12, %14 : vector<16x64xf32>
      %cst_14 = arith.constant 5.000000e-01 : f32
      %16 = vector.broadcast %cst_14 : f32 to vector<16x64xf32>
      %17 = arith.mulf %16, %15 : vector<16x64xf32>
      %cst_15 = arith.constant 0.707106769 : f32
      %18 = vector.broadcast %cst_15 : f32 to vector<16x64xf32>
      %19 = arith.mulf %15, %18 : vector<16x64xf32>
      %20 = math.erf %19 : vector<16x64xf32>
      %cst_16 = arith.constant 1.000000e+00 : f32
      %21 = vector.broadcast %cst_16 : f32 to vector<16x64xf32>
      %22 = arith.addf %21, %20 : vector<16x64xf32>
      %23 = arith.mulf %17, %22 : vector<16x64xf32>
      %24 = arith.truncf %23 : vector<16x64xf32> to vector<16x64xbf16>
      %c0_17 = arith.constant 0 : index
      %c0_18 = arith.constant 0 : index
      %25 = vector.load %arg6[%c0_17, %c0_18] : memref<16x64xbf16, #tpu.memory_space<vmem>>, vector<16x64xbf16>
      tpu.vector_store %arg6[%c0_17, %c0_18], %24 {strides = array<i32>} : memref<16x64xbf16, #tpu.memory_space<vmem>>, vector<16x64xbf16>,
    } else {
    }
    return
  }
  func.func @transform_0(%arg0: i32, %arg1: i32, %arg2: i32) -> (i32, i32) {
    %c0_i32 = arith.constant 0 : i32
    return %arg0, %arg2 : i32, i32
  }
  func.func @transform_1(%arg0: i32, %arg1: i32, %arg2: i32) -> (i32, i32) {
    %c0_i32 = arith.constant 0 : i32
    return %arg2, %arg1 : i32, i32
  }
  func.func @transform_2(%arg0: i32, %arg1: i32, %arg2: i32) -> (i32, i32) {
    %c0_i32 = arith.constant 0 : i32
    %c0_i32_0 = arith.constant 0 : i32
    return %c0_i32, %arg1 : i32, i32
  }
  func.func @transform_3(%arg0: i32, %arg1: i32, %arg2: i32) -> (i32, i32) {
    %c0_i32 = arith.constant 0 : i32
    return %arg0, %arg1 : i32, i32
  }
}

module attributes {stable_mosaic.version = 11 : i64} {
  func.func @_linear_kernel(%arg0: i32, %arg1: i32, %arg2: i32, %arg3: memref<16x64xbf16, #tpu.memory_space<vmem>>, %arg4: memref<64x32xbf16, #tpu.memory_space<vmem>>, %arg5: memref<1x32xf32, #tpu.memory_space<vmem>>, %arg6: memref<16x32xbf16, #tpu.memory_space<vmem>>, %arg7: memref<16x32xf32, #tpu.memory_space<vmem>>) attributes {dimension_semantics = [#tpu.dimension_semantics<parallel>, #tpu.dimension_semantics<parallel>, #tpu.dimension_semantics<arbitrary>], iteration_bounds = array<i64: 1, 1, 1>, scalar_prefetch = 0 : i64, scratch_operands = 1 : i64, tpu.core_type = #tpu.core_type<tc>, window_params = [{transform_indices = @transform_0, window_bounds = array<i64: 16, 64>}, {transform_indices = @transform_1, window_bounds = array<i64: 64, 32>}, {transform_indices = @transform_2, window_bounds = array<i64: 1, 32>}, {transform_indices = @transform_3, window_bounds = array<i64: 16, 32>}]} {
    %c0_i32 = arith.constant 0 : i32
    %0 = arith.cmpi eq, %arg2, %c0_i32 : i32
    %1 = arith.extui %0 : i1 to i32
    %c0_i32_0 = arith.constant 0 : i32
    %2 = arith.cmpi ne, %1, %c0_i32_0 : i32
    scf.if %2 {
      %cst_10 = arith.constant 0.000000e+00 : f32
      %12 = vector.broadcast %cst_10 : f32 to vector<16x32xf32>
      %c0_11 = arith.constant 0 : index
      %c0_12 = arith.constant 0 : index
      %13 = vector.load %arg7[%c0_11, %c0_12] : memref<16x32xf32, #tpu.memory_space<vmem>>, vector<16x32xf32>
      tpu.vector_store %arg7[%c0_11, %c0_12], %12 {strides = array<i32>} : memref<16x32xf32, #tpu.memory_space<vmem>>, vector<16x32xf32>,
    } else {
    }
    %c0 = arith.constant 0 : index
    %c0_1 = arith.constant 0 : index
    %3 = vector.load %arg7[%c0, %c0_1] : memref<16x32xf32, #tpu.memory_space<vmem>>, vector<16x32xf32>
    %c0_2 = arith.constant 0 : index
    %c0_3 = arith.constant 0 : index
    %4 = vector.load %arg3[%c0_2, %c0_3] : memref<16x64xbf16, #tpu.memory_space<vmem>>, vector<16x64xbf16>
    %c0_4 = arith.constant 0 : index
    %c0_5 = arith.constant 0 : index
    %5 = vector.load %arg4[%c0_4, %c0_5] : memref<64x32xbf16, #tpu.memory_space<vmem>>, vector<64x32xbf16>
    %cst = arith.constant dense<0.000000e+00> : vector<16x32xf32>
    %6 = tpu.matmul %4, %5, %cst {dimension_numbers = #tpu.dot_dimension_numbers<[1], [0], [0], [1], [0, 0, 1, 1], [], []>} : vector<16x64xbf16>, vector<64x32xbf16>, vector<16x32xf32> -> vector<16x32xf32>
    %7 = arith.addf %3, %6 : vector<16x32xf32>
    %c0_6 = arith.constant 0 : index
    %c0_7 = arith.constant 0 : index
    %8 = vector.load %arg7[%c0_6, %c0_7] : memref<16x32xf32, #tpu.memory_space<vmem>>, vector<16x32xf32>
    tpu.vector_store %arg7[%c0_6, %c0_7], %7 {strides = array<i32>} : memref<16x32xf32, #tpu.memory_space<vmem>>, vector<16x32xf32>,
    %c0_i32_8 = arith.constant 0 : i32
    %9 = arith.cmpi eq, %arg2, %c0_i32_8 : i32
    %10 = arith.extui %9 : i1 to i32
    %c0_i32_9 = arith.constant 0 : i32
    %11 = arith.cmpi ne, %10, %c0_i32_9 : i32
    scf.if %11 {
      %c0_10 = arith.constant 0 : index
      %c0_11 = arith.constant 0 : index
      %12 = vector.load %arg7[%c0_10, %c0_11] : memref<16x32xf32, #tpu.memory_space<vmem>>, vector<16x32xf32>
      %c0_12 = arith.constant 0 : index
      %c0_13 = arith.constant 0 : index
      %13 = vector.load %arg5[%c0_12, %c0_13] : memref<1x32xf32, #tpu.memory_space<vmem>>, vector<1x32xf32>
      %14 = vector.broadcast %13 : vector<1x32xf32> to vector<16x32xf32>
      %15 = arith.addf %12, %14 : vector<16x32xf32>
      %16 = arith.truncf %15 : vector<16x32xf32> to vector<16x32xbf16>
      %c0_14 = arith.constant 0 : index
      %c0_15 = arith.constant 0 : index
      %17 = vector.load %arg6[%c0_14, %c0_15] : memref<16x32xbf16, #tpu.memory_space<vmem>>, vector<16x32xbf16>
      tpu.vector_store %arg6[%c0_14, %c0_15], %16 {strides = array<i32>} : memref<16x32xbf16, #tpu.memory_space<vmem>>, vector<16x32xbf16>,
    } else {
    }
    return
  }
  func.func @transform_0(%arg0: i32, %arg1: i32, %arg2: i32) -> (i32, i32) {
    %c0_i32 = arith.constant 0 : i32
    return %arg0, %arg2 : i32, i32
  }
  func.func @transform_1(%arg0: i32, %arg1: i32, %arg2: i32) -> (i32, i32) {
    %c0_i32 = arith.constant 0 : i32
    return %arg2, %arg1 : i32, i32
  }
  func.func @transform_2(%arg0: i32, %arg1: i32, %arg2: i32) -> (i32, i32) {
    %c0_i32 = arith.constant 0 : i32
    %c0_i32_0 = arith.constant 0 : i32
    return %c0_i32, %arg1 : i32, i32
  }
  func.func @transform_3(%arg0: i32, %arg1: i32, %arg2: i32) -> (i32, i32) {
    %c0_i32 = arith.constant 0 : i32
    return %arg0, %arg1 : i32, i32
  }
}

module attributes {stable_mosaic.version = 11 : i64} {
  func.func @_linear_kernel(%arg0: i32, %arg1: i32, %arg2: i32, %arg3: memref<16x32xbf16, #tpu.memory_space<vmem>>, %arg4: memref<32x16xbf16, #tpu.memory_space<vmem>>, %arg5: memref<1x16xf32, #tpu.memory_space<vmem>>, %arg6: memref<16x16xf32, #tpu.memory_space<vmem>>, %arg7: memref<16x16xf32, #tpu.memory_space<vmem>>) attributes {dimension_semantics = [#tpu.dimension_semantics<parallel>, #tpu.dimension_semantics<parallel>, #tpu.dimension_semantics<arbitrary>], iteration_bounds = array<i64: 1, 1, 1>, scalar_prefetch = 0 : i64, scratch_operands = 1 : i64, tpu.core_type = #tpu.core_type<tc>, window_params = [{transform_indices = @transform_0, window_bounds = array<i64: 16, 32>}, {transform_indices = @transform_1, window_bounds = array<i64: 32, 16>}, {transform_indices = @transform_2, window_bounds = array<i64: 1, 16>}, {transform_indices = @transform_3, window_bounds = array<i64: 16, 16>}]} {
    %c0_i32 = arith.constant 0 : i32
    %0 = arith.cmpi eq, %arg2, %c0_i32 : i32
    %1 = arith.extui %0 : i1 to i32
    %c0_i32_0 = arith.constant 0 : i32
    %2 = arith.cmpi ne, %1, %c0_i32_0 : i32
    scf.if %2 {
      %cst_10 = arith.constant 0.000000e+00 : f32
      %12 = vector.broadcast %cst_10 : f32 to vector<16x16xf32>
      %c0_11 = arith.constant 0 : index
      %c0_12 = arith.constant 0 : index
      %13 = vector.load %arg7[%c0_11, %c0_12] : memref<16x16xf32, #tpu.memory_space<vmem>>, vector<16x16xf32>
      tpu.vector_store %arg7[%c0_11, %c0_12], %12 {strides = array<i32>} : memref<16x16xf32, #tpu.memory_space<vmem>>, vector<16x16xf32>,
    } else {
    }
    %c0 = arith.constant 0 : index
    %c0_1 = arith.constant 0 : index
    %3 = vector.load %arg7[%c0, %c0_1] : memref<16x16xf32, #tpu.memory_space<vmem>>, vector<16x16xf32>
    %c0_2 = arith.constant 0 : index
    %c0_3 = arith.constant 0 : index
    %4 = vector.load %arg3[%c0_2, %c0_3] : memref<16x32xbf16, #tpu.memory_space<vmem>>, vector<16x32xbf16>
    %c0_4 = arith.constant 0 : index
    %c0_5 = arith.constant 0 : index
    %5 = vector.load %arg4[%c0_4, %c0_5] : memref<32x16xbf16, #tpu.memory_space<vmem>>, vector<32x16xbf16>
    %cst = arith.constant dense<0.000000e+00> : vector<16x16xf32>
    %6 = tpu.matmul %4, %5, %cst {dimension_numbers = #tpu.dot_dimension_numbers<[1], [0], [0], [1], [0, 0, 1, 1], [], []>} : vector<16x32xbf16>, vector<32x16xbf16>, vector<16x16xf32> -> vector<16x16xf32>
    %7 = arith.addf %3, %6 : vector<16x16xf32>
    %c0_6 = arith.constant 0 : index
    %c0_7 = arith.constant 0 : index
    %8 = vector.load %arg7[%c0_6, %c0_7] : memref<16x16xf32, #tpu.memory_space<vmem>>, vector<16x16xf32>
    tpu.vector_store %arg7[%c0_6, %c0_7], %7 {strides = array<i32>} : memref<16x16xf32, #tpu.memory_space<vmem>>, vector<16x16xf32>,
    %c0_i32_8 = arith.constant 0 : i32
    %9 = arith.cmpi eq, %arg2, %c0_i32_8 : i32
    %10 = arith.extui %9 : i1 to i32
    %c0_i32_9 = arith.constant 0 : i32
    %11 = arith.cmpi ne, %10, %c0_i32_9 : i32
    scf.if %11 {
      %c0_10 = arith.constant 0 : index
      %c0_11 = arith.constant 0 : index
      %12 = vector.load %arg7[%c0_10, %c0_11] : memref<16x16xf32, #tpu.memory_space<vmem>>, vector<16x16xf32>
      %c0_12 = arith.constant 0 : index
      %c0_13 = arith.constant 0 : index
      %13 = vector.load %arg5[%c0_12, %c0_13] : memref<1x16xf32, #tpu.memory_space<vmem>>, vector<1x16xf32>
      %14 = vector.broadcast %13 : vector<1x16xf32> to vector<16x16xf32>
      %15 = arith.addf %12, %14 : vector<16x16xf32>
      %c0_14 = arith.constant 0 : index
      %c0_15 = arith.constant 0 : index
      %16 = vector.load %arg6[%c0_14, %c0_15] : memref<16x16xf32, #tpu.memory_space<vmem>>, vector<16x16xf32>
      tpu.vector_store %arg6[%c0_14, %c0_15], %15 {strides = array<i32>} : memref<16x16xf32, #tpu.memory_space<vmem>>, vector<16x16xf32>,
    } else {
    }
    return
  }
  func.func @transform_0(%arg0: i32, %arg1: i32, %arg2: i32) -> (i32, i32) {
    %c0_i32 = arith.constant 0 : i32
    return %arg0, %arg2 : i32, i32
  }
  func.func @transform_1(%arg0: i32, %arg1: i32, %arg2: i32) -> (i32, i32) {
    %c0_i32 = arith.constant 0 : i32
    return %arg2, %arg1 : i32, i32
  }
  func.func @transform_2(%arg0: i32, %arg1: i32, %arg2: i32) -> (i32, i32) {
    %c0_i32 = arith.constant 0 : i32
    %c0_i32_0 = arith.constant 0 : i32
    return %c0_i32, %arg1 : i32, i32
  }
  func.func @transform_3(%arg0: i32, %arg1: i32, %arg2: i32) -> (i32, i32) {
    %c0_i32 = arith.constant 0 : i32
    return %arg0, %arg1 : i32, i32
  }
}

</mosaic_0001>

<bundles_post_ra>
// kernel: _lambda_.17
= control target key start
LH: loop header
LB: loop body
LE: loop exit
PB: predicated region body
PF: predicated region fallthrough
CT: control target
= control target key end

     0   :  { %vm19_vm0 = vcmask 785408   ;;  %v151_v0 = vmov 0.0   ;;  %vm152_vm1 = vmmov 0   ;;  %vm47_vm2 = vcmask 261120   ;;  %s195_s1 = inlined_call_operand.vmem [shape: bf16[32,96], index: 1, kind: input, shape index: {}]   ;;  %s196_s0 = inlined_call_operand.vmem [shape: bf16[16,32], index: 0, kind: input, shape index: {}]   ;;  %s197_s2 = inlined_call_operand.vmem [shape: f32[1,96], index: 2, kind: input, shape index: {}]   ;;  %s198_s3 = inlined_call_operand.vmem [shape: bf16[16,96], index: 3, kind: output, shape index: {}]  }
   0x1   :  { %138 = vmatprep.subr.bf16.mxu0 %v151_v0  ;;  %v148_v1 = vld [vmem:[%s195_s1 + $0x8] sm:$0xff]   ;;  %142 = vmatprep.mubr.msk.bf16.mxu0 %vm152_vm1, %v151_v0  ;;  %20 = vst.msk [vmem:[#allocation2] sm:$0xff] %vm19_vm0, %v151_v0  ;;  %21 = vst.msk [vmem:[#allocation2 + $0x8] sm:$0xff] %vm19_vm0, %v151_v0  ;;  %v149_v2 = vld [vmem:[%s195_s1] sm:$0xff]   ;;  %vm119_vm3 = vcmask 781312  }
   0x2   :  { %139 = vmatpush3.bf16.msra.mxu0 %v148_v1  ;;  %v150_v3 = vld [vmem:[%s196_s0] sm:$0xff]  }
   0x3   :  { %140 = vmatprep.subr.bf16.mxu0 %v151_v0  ;;  %v130_v12 = vld [vmem:[%s197_s2] ss:$0 sm:$0xff] }
   0x6   :  { %141 = vmatpush3.bf16.msra.mxu0 %v149_v2 }
   0x8   :  { %v22_v4 = vld [vmem:[#allocation2] sm:$0xff]  ;;  %v23_v8 = vld [vmem:[#allocation2 + $0x8] sm:$0xff] }
   0x9   :  { %143 = vmatmul.mubr.msk.bf16.vlgmr.msra.gmra.mxu0 %vm47_vm2, %v150_v3 }
  0xc9   :  { %v85_v5 = vpop.f32.mrf.mxu0 }
  0xca   :  { %v92_v6 = vadd.f32 %v85_v5, %v22_v4 }
  0xcb   :  { %v144_v7 = vpop.f32.mrf.mxu0 }
  0xcc   :  { %95 = vst.msk [vmem:[#allocation2] sm:$0xff] %vm19_vm0, %v92_v6 }
  0xcd   :  { %v88_v9 = vpop.f32.mrf.mxu0 }
  0xce   :  { %v93_v10 = vadd.f32 %v88_v9, %v23_v8 }
  0xcf   :  { %v145_v11 = vpop.f32.mrf.mxu0 }
  0xd0   :  { %96 = vst.msk [vmem:[#allocation2 + $0x8] sm:$0xff] %vm19_vm0, %v93_v10 }
  0xd3   :  { %v100_v13 = vld [vmem:[#allocation2] sm:$0xff] }
  0xd4   :  { %v109_v14 = vadd.f32 %v130_v12, %v100_v13 }
  0xd6   :  { %v133_v15 = vpack.c.bf16 %v109_v14, %v109_v14 }
  0xd7   :  { %v101_v16 = vld [vmem:[#allocation2 + $0x8] sm:$0xff] }
  0xd8   :  { %120 = vst.msk [vmem:[%s198_s3] sm:$0xf] %vm119_vm3, %v133_v15  ;;  %v110_v17 = vadd.f32 %v130_v12, %v101_v16 }
  0xda   :  { %v134_v18 = vpack.c.bf16 %v110_v17, %v110_v17 }
  0xdc   :  { %121 = vst.msk [vmem:[%s198_s3 + $0x4] sm:$0xf] %vm119_vm3, %v134_v18 }

// kernel: _lambda_.19
= control target key start
LH: loop header
LB: loop body
LE: loop exit
PB: predicated region body
PF: predicated region fallthrough
CT: control target
= control target key end

     0   :  { %vm19_vm0 = vcmask 261120   ;;  %v150_v0 = vmov 0.0   ;;  %vm151_vm1 = vmmov 0   ;;  %vm118_vm2 = vcmask 257024   ;;  %s195_s1 = inlined_call_operand.vmem [shape: bf16[32,32], index: 1, kind: input, shape index: {}]   ;;  %s196_s0 = inlined_call_operand.vmem [shape: bf16[16,32], index: 0, kind: input, shape index: {}]   ;;  %s197_s2 = inlined_call_operand.vmem [shape: f32[1,32], index: 2, kind: input, shape index: {}]   ;;  %s198_s3 = inlined_call_operand.vmem [shape: bf16[16,32], index: 3, kind: output, shape index: {}]  }
   0x1   :  { %137 = vmatprep.subr.bf16.mxu0 %v150_v0  ;;  %v147_v1 = vld [vmem:[%s195_s1 + $0x8] sm:$0xff]   ;;  %141 = vmatprep.mubr.msk.bf16.mxu0 %vm151_vm1, %v150_v0  ;;  %20 = vst.msk [vmem:[#allocation2] sm:$0xff] %vm19_vm0, %v150_v0  ;;  %21 = vst.msk [vmem:[#allocation2 + $0x8] sm:$0xff] %vm19_vm0, %v150_v0  ;;  %v148_v2 = vld [vmem:[%s195_s1] sm:$0xff]  }
   0x2   :  { %138 = vmatpush3.bf16.msra.mxu0 %v147_v1  ;;  %v149_v3 = vld [vmem:[%s196_s0] sm:$0xff]  }
   0x3   :  { %139 = vmatprep.subr.bf16.mxu0 %v150_v0  ;;  %v129_v12 = vld [vmem:[%s197_s2] ss:$0 sm:$0xff] }
   0x6   :  { %140 = vmatpush3.bf16.msra.mxu0 %v148_v2 }
   0x8   :  { %v22_v4 = vld [vmem:[#allocation2] sm:$0xff]  ;;  %v23_v8 = vld [vmem:[#allocation2 + $0x8] sm:$0xff] }
   0x9   :  { %142 = vmatmul.mubr.msk.bf16.vlgmr.msra.gmra.mxu0 %vm19_vm0, %v149_v3 }
  0xc9   :  { %v85_v5 = vpop.f32.mrf.mxu0 }
  0xca   :  { %v92_v6 = vadd.f32 %v85_v5, %v22_v4 }
  0xcb   :  { %v143_v7 = vpop.f32.mrf.mxu0 }
  0xcc   :  { %94 = vst.msk [vmem:[#allocation2] sm:$0xff] %vm19_vm0, %v92_v6 }
  0xcd   :  { %v88_v9 = vpop.f32.mrf.mxu0 }
  0xce   :  { %v93_v10 = vadd.f32 %v88_v9, %v23_v8 }
  0xcf   :  { %v144_v11 = vpop.f32.mrf.mxu0 }
  0xd0   :  { %95 = vst.msk [vmem:[#allocation2 + $0x8] sm:$0xff] %vm19_vm0, %v93_v10 }
  0xd3   :  { %v99_v13 = vld [vmem:[#allocation2] sm:$0xff] }
  0xd4   :  { %v108_v14 = vadd.f32 %v129_v12, %v99_v13 }
  0xd6   :  { %v132_v15 = vpack.c.bf16 %v108_v14, %v108_v14 }
  0xd7   :  { %v100_v16 = vld [vmem:[#allocation2 + $0x8] sm:$0xff] }
  0xd8   :  { %119 = vst.msk [vmem:[%s198_s3] sm:$0xf] %vm118_vm2, %v132_v15  ;;  %v109_v17 = vadd.f32 %v129_v12, %v100_v16 }
  0xda   :  { %v133_v18 = vpack.c.bf16 %v109_v17, %v109_v17 }
  0xdc   :  { %120 = vst.msk [vmem:[%s198_s3 + $0x4] sm:$0xf] %vm118_vm2, %v133_v18 }

// kernel: _lambda_.16
= control target key start
LH: loop header
LB: loop body
LE: loop exit
PB: predicated region body
PF: predicated region fallthrough
CT: control target
= control target key end

     0   :  { %vm16_vm0 = vcmask 261120   ;;  %vm70_vm1 = vcmask 257024   ;;  %s129_s0 = inlined_call_operand.vmem [shape: f32[16,32], index: 0, kind: input, shape index: {}]   ;;  %s130_s1 = inlined_call_operand.vmem [shape: f32[1,32], index: 1, kind: input, shape index: {}]   ;;  %s131_s2 = inlined_call_operand.vmem [shape: f32[1,32], index: 2, kind: input, shape index: {}]   ;;  %s132_s3 = inlined_call_operand.vmem [shape: bf16[16,32], index: 3, kind: output, shape index: {}]  }
   0x1   :  { %v14_v0 = vld [vmem:[%s129_s0] sm:$0xff]  ;;  %v15_v1 = vld [vmem:[%s129_s0 + $0x8] sm:$0xff] }
   0x2   :  { %v17_v2 = vsel %vm16_vm0, %v14_v0, 0.0  ;;  %v20_v3 = vsel %vm16_vm0, %v15_v1, 0.0  ;;  %v77_v21 = vld [vmem:[%s130_s1] ss:$0 sm:$0xff] }
   0x3   :  { %18 = vadd.xlane.f32.xlu0 %v17_v2  ;;  %v78_v23 = vld [vmem:[%s131_s2] ss:$0 sm:$0xff] }
   0x7   :  { %21 = vadd.xlane.f32.xlu0 %v20_v3 }
  0x8c   :  { %v19_v4 = vpop.xlane.xlu0 %18 }
  0x8d   :  { %v24_v5 = vmul.f32 0.03125, %v19_v4 }
  0x8f   :  { %v26_v6 = vsub.f32 %v14_v0, %v24_v5 }
  0x90   :  { %v22_v7 = vpop.xlane.xlu0 %21 }
  0x91   :  { %v25_v8 = vmul.f32 0.03125, %v22_v7  ;;  %v28_v9 = vmul.f32 %v26_v6, %v26_v6 }
  0x93   :  { %v27_v10 = vsub.f32 %v15_v1, %v25_v8  ;;  %v30_v11 = vsel %vm16_vm0, %v28_v9, 0.0 }
  0x94   :  { %31 = vadd.xlane.f32.xlu1 %v30_v11 }
  0x95   :  { %v29_v12 = vmul.f32 %v27_v10, %v27_v10 }
  0x97   :  { %v33_v13 = vsel %vm16_vm0, %v29_v12, 0.0 }
  0x98   :  { %34 = vadd.xlane.f32.xlu1 %v33_v13 }
 0x11d   :  { %v32_v14 = vpop.xlane.xlu1 %31 }
 0x11e   :  { %v36_v15 = vmul.f32 0.03125, %v32_v14 }
 0x120   :  { %v38_v16 = vadd.f32 1e-12, %v36_v15 }
 0x121   :  { %v35_v17 = vpop.xlane.xlu1 %34 }
 0x122   :  { %83 = vrsqrt.f32 %v38_v16  ;;  %v37_v18 = vmul.f32 0.03125, %v35_v17 }
 0x124   :  { %v39_v19 = vadd.f32 1e-12, %v37_v18 }
 0x126   :  { %85 = vrsqrt.f32 %v39_v19 }
 0x12f   :  { %v84_v20 = vpop.eup %83 }
 0x130   :  { %v42_v22 = vmul.f32 %v84_v20, %v26_v6 }
 0x132   :  { %v51_v24 = vmul.f32 %v77_v21, %v42_v22 }
 0x133   :  { %v86_v25 = vpop.eup %85 }
 0x134   :  { %v60_v26 = vadd.f32 %v78_v23, %v51_v24  ;;  %v43_v27 = vmul.f32 %v86_v25, %v27_v10 }
 0x136   :  { %v81_v28 = vpack.c.bf16 %v60_v26, %v60_v26  ;;  %v52_v29 = vmul.f32 %v77_v21, %v43_v27 }
 0x138   :  { %71 = vst.msk [vmem:[%s132_s3] sm:$0xf] %vm70_vm1, %v81_v28  ;;  %v61_v30 = vadd.f32 %v78_v23, %v52_v29 }
 0x13a   :  { %v82_v31 = vpack.c.bf16 %v61_v30, %v61_v30 }
 0x13c   :  { %72 = vst.msk [vmem:[%s132_s3 + $0x4] sm:$0xf] %vm70_vm1, %v82_v31 }

// kernel: _lambda_.18
= control target key start
LH: loop header
LB: loop body
LE: loop exit
PB: predicated region body
PF: predicated region fallthrough
CT: control target
= control target key end

     0   :  { %s1135_s15 = smov 0   ;;  %s1137_s16 = smov 0   ;;  %s1264_s0 = inlined_call_operand.vmem [shape: bf16[2,8,32], index: 0, kind: input, shape index: {}]   ;;  %s1265_s1 = inlined_call_operand.vmem [shape: bf16[2,8,32], index: 1, kind: input, shape index: {}]   ;;  %s1266_s2 = inlined_call_operand.vmem [shape: bf16[2,8,32], index: 2, kind: input, shape index: {}]   ;;  %s1267_s3 = inlined_call_operand.vmem [shape: f32[2,1,8], index: 3, kind: input, shape index: {}]   ;;  %s1268_s4 = inlined_call_operand.vmem [shape: bf16[2,8,32], index: 4, kind: output, shape index: {}]  }
   0x1   :  { %s1139_s17 = smov 0  }
   0x2 LB: > { %s26_s18 = sadd.s32 1, %s1096_s16  ;;  %p929_p0 = scmp.ge.s32.totalorder %s1100_s17, 1  ;;  %s1100_s17 = sphi %s1139_s17, %s14_s17   ;;  %s1096_s16 = sphi %s1137_s16, %s1270_s16   ;;  %s1092_s15 = sphi %s1135_s15, %s1269_s15  }
   0x3   : > { %p28_p1 = scmp.ge.s32.totalorder %s26_s18, 2  ;;  %p216_p2 = scmp.lt.s32.totalorder %s1100_s17, 3 }
   0x5   : > { %s1272_s18 = smov (%p28_p1, %s26_s18), 0  ;;  %p217_p3 = pnand %p929_p0, %p216_p2 }
   0x6   : > { %p263_p4 = scmp.lt.s32.totalorder (!%p217_p3), %s1092_s15, 1  ;;  %s1104_s29 = smov (!%p217_p3), 120  }
   0x7   : > { %220 = sbr.rel (%p217_p3) target bundleno = 1414 (0x586), region = 36  ;;  %s1105_s30 = smov (!%p217_p3), 112  }
   0x8   : > { %s1106_s5 = smov (!%p217_p3), 104   ;;  %s1107_s12 = smov (!%p217_p3), 8  }
   0x9   : > { %s1108_s13 = smov (!%p217_p3), 16   ;;  %s1109_s14 = smov (!%p217_p3), 24  }
   0xc   : > { %v1102_v0 = vmov 0.0   ;;  %vm1103_vm0 = vmmov 0   ;;  %s1274_s15 = smov (!%p263_p4, %s1092_s15), 1  ;;  %vm307_vm1 = vcmask 64512   ;;  %vm369_vm2 = vcmask 1043456  }
   0xd   : > { %976 = vmatprep.subr.bf16.mxu0 %v1102_v0  ;;  %978 = vmatprep.mubr.msk.bf16.mxu0 %vm1103_vm0, %v1102_v0  ;;  %s1159_s19 = sshll.u32 %s1274_s15, 2  ;;  %s286_s28 = scalar_lea.vmem %s1267_s3, %s1274_s15  ;;  %vm414_vm3 = vcmask 60416   ;;  %vm546_vm4 = vcmask 126016   ;;  %vm678_vm5 = vcmask 191616   ;;  %vm810_vm6 = vcmask 257216  }
   0xe   : > { %982 = vmatprep.subr.bf16.mxu1 %v1102_v0  ;;  %984 = vmatprep.mubr.msk.bf16.mxu1 %vm1103_vm0, %v1102_v0  ;;  %s1165_s22 = scalar_lea.vmem %s1265_s1, %s1159_s19  ;;  %s269_s25 = scalar_lea.vmem %s1264_s0, %s1159_s19  ;;  %v1180_v5 = vld [vmem:[%s286_s28] ss:$0 sm:$0xff] }
   0xf   : > { %v299_v1 = vld [vmem:[%s1165_s22] sm:$0xf]  ;;  %s1196_s8 = scalar_lea.vmem %s1266_s2, %s1159_s19  ;;  %s1222_s11 = scalar_lea.vmem %s1268_s4, %s1159_s19 }
  0x10   : > { %v312_v2 = vsel %vm307_vm1, %v299_v1, 0  ;;  %v297_v3 = vld [vmem:[%s269_s25] sm:$0xf] }
  0x11   : > { %977 = vmatpush3.bf16.xpose.msra.mxu0 %v312_v2  ;;  %v298_v4 = vmul.bf16 1052065461, %v297_v3  ;;  %v1056_v12 = vld [vmem:[%s1165_s22] ss:$0 sps:$4 sm:$0xff]  }
  0x12   : > { %994 = vmatprep.subr.bf16.mxu0 %v1102_v0  ;;  %v416_v13 = vld [vmem:[%s269_s25] sm:$0xf]  ;;  %428 = vrot.lane.b32.xlu1 %v1056_v12, %s1104_s29 }
  0x13   : > { %v417_v14 = vmul.bf16 1052065461, %v416_v13  ;;  %v548_v16 = vld [vmem:[%s269_s25] sm:$0xf] }
  0x14   : > { %v549_v17 = vmul.bf16 1052065461, %v548_v16  ;;  %v680_v18 = vld [vmem:[%s269_s25] sm:$0xf] }
  0x15   : > { %v937_v15 = vcombine.low %v417_v14, %v417_v14  ;;  %v1058_v20 = vld [vmem:[%s1165_s22] ss:$0 sps:$4 sm:$0xff]   ;;  %v681_v21 = vmul.bf16 1052065461, %v680_v18 }
  0x16   : > { %v943_v19 = vcombine.low %v549_v17, %v549_v17  ;;  %v300_v28 = vld [vmem:[%s1196_s8] sm:$0xf] }
  0x17   : > { %423 = vrot.lane.b32.xlu1 %v937_v15, %s1104_s29  ;;  %v949_v22 = vcombine.low %v681_v21, %v681_v21  ;;  %v371_v29 = vsel %vm369_vm2, %v300_v28, 0  ;;  %v1057_v30 = vld [vmem:[%s1165_s22] ss:$0 sps:$4 sm:$0xff]  }
  0x18   : > { %979 = vmatmul.mubr.msk.bf16.vlgmr.msra.gmra.mxu0 %vm307_vm1, %v298_v4  ;;  %983 = vmatpush3.bf16.msra.mxu1 %v371_v29  ;;  %v1059_v14 = vld [vmem:[%s1196_s8] ss:$0 sps:$4 sm:$0xff]  }
  0x19   : > { %996 = vmatprep.mubr.msk.bf16.mxu0 %vm1103_vm0, %v1102_v0  ;;  %988 = vmatprep.subr.bf16.mxu1 %v1102_v0  ;;  %v1060_v16 = vld [vmem:[%s1196_s8] ss:$0 sps:$4 sm:$0xff]  }
  0x1a   : > { %v1061_v21 = vld [vmem:[%s1196_s8] ss:$0 sps:$4 sm:$0xff]  }
  0x1b   : > { %555 = vrot.lane.b32.xlu1 %v943_v19, %s1105_s30 }
  0x1f   : > { %692 = vrot.lane.b32.xlu1 %v1058_v20, %s1106_s5 }
  0x23   : > { %687 = vrot.lane.b32.xlu1 %v949_v22, %s1106_s5 }
  0x84   : > { %v429_v33 = vpop.permute.xlu1 %428 }
  0x85   : > { %v434_v35 = vsel %vm307_vm1, %v429_v33, 0 }
  0x89   : > { %v424_v37 = vpop.permute.xlu1 %423 }
  0x8d   : > { %v556_v39 = vpop.permute.xlu1 %555 }
  0x91   : > { %v693_v41 = vpop.permute.xlu1 %692 }
  0x92   : > { %v698_v42 = vsel %vm307_vm1, %v693_v41, 0 }
  0x95   : > { %v688_v43 = vpop.permute.xlu1 %687 }
  0xd8   : > { %v348_v6 = vpop.f32.mrf.mxu0 }
  0xd9   : > { %v349_v7 = vadd.f32 %v1180_v5, %v348_v6 }
  0xda   : > { %v980_v8 = vpop.f32.mrf.mxu0 }
  0xdb   : > { %v354_v9 = vsel %vm307_vm1, %v349_v7, -inf }
  0xdc   : > { %355 = vmax.xlane.f32.xlu0 %v354_v9  ;;  %v351_v10 = vpop.f32.mrf.mxu0 }
  0xde   : > { %v981_v11 = vpop.f32.mrf.mxu0 }
 0x165   : > { %v356_v23 = vpop.xlane.xlu0 %355 }
 0x166   : > { %v357_v24 = vsub.f32 %v349_v7, %v356_v23 }
 0x168   : > { %v358_v25 = vmul.f32 1.442695, %v357_v24 }
 0x16a   : > { %1062 = vpow2.f32 %v358_v25 }
 0x177   : > { %v1063_v26 = vpop.eup %1062 }
 0x178   : > { %v360_v27 = vsel %vm307_vm1, %v1063_v26, 0.0 }
 0x179   : > { %361 = vadd.xlane.f32.xlu0 %v360_v27 }
 0x18f   : > { %560 = vrot.lane.b32.xlu0 %v1057_v30, %s1105_s30 }
 0x202   : > { %v362_v31 = vpop.xlane.xlu0 %361 }
 0x203   : > { %1064 = vrcp.f32 %v362_v31 }
 0x206   : > { %v561_v38 = vpop.permute.xlu0 %560 }
 0x207   : > { %v566_v40 = vsel %vm307_vm1, %v561_v38, 0 }
 0x210   : > { %v1065_v32 = vpop.eup %1064 }
 0x211   : > { %v364_v34 = vmul.f32 %v1065_v32, %v1063_v26 }
 0x213   : > { %v365_v36 = vpack.c.bf16 %v364_v34, %v364_v34 }
 0x215   : > { %985 = vmatmul.mubr.msk.bf16.vlgmr.msra.gmra.mxu1 %vm307_vm1, %v365_v36 }
 0x216   : > { %989 = vmatpush3.bf16.xpose.msra.mxu1 %v434_v35  ;;  %990 = vmatprep.mubr.msk.bf16.mxu1 %vm1103_vm0, %v1102_v0 }
 0x217   : > { %1000 = vmatprep.subr.bf16.mxu1 %v1102_v0 }
 0x21d   : > { %991 = vmatmul.mubr.msk.bf16.vlgmr.msra.gmra.mxu1 %vm307_vm1, %v424_v37 }
 0x21e   : > { %1001 = vmatpush3.bf16.xpose.msra.mxu1 %v566_v40  ;;  %1002 = vmatprep.mubr.msk.bf16.mxu1 %vm1103_vm0, %v1102_v0 }
 0x21f   : > { %1012 = vmatprep.subr.bf16.mxu1 %v1102_v0 }
 0x225   : > { %1003 = vmatmul.mubr.msk.bf16.vlgmr.msra.gmra.mxu1 %vm307_vm1, %v556_v39 }
 0x226   : > { %1013 = vmatpush3.bf16.xpose.msra.mxu1 %v698_v42  ;;  %1014 = vmatprep.mubr.msk.bf16.mxu1 %vm1103_vm0, %v1102_v0 }
 0x22d   : > { %1015 = vmatmul.mubr.msk.bf16.vlgmr.msra.gmra.mxu1 %vm307_vm1, %v688_v43 }
 0x2d5   : > { %v407_v44 = vpop.f32.mrf.mxu1 }
 0x2d6   : > { %v413_v45 = vpack.c.bf16 %v407_v44, %v407_v44 }
 0x2d7   : > { %v986_v46 = vpop.f32.mrf.mxu1 }
 0x2d8   : > { %415 = vst.msk [vmem:[%s1222_s11] sm:$0xf] %vm414_vm3, %v413_v45 }
 0x2d9   : > { %v410_v47 = vpop.f32.mrf.mxu1 }
 0x2db   : > { %v987_v48 = vpop.f32.mrf.mxu1 }
 0x2dd   : > { %v470_v49 = vpop.f32.mrf.mxu1 }
 0x2de   : > { %v471_v50 = vadd.f32 %v1180_v5, %v470_v49 }
 0x2df   : > { %v992_v51 = vpop.f32.mrf.mxu1 }
 0x2e0   : > { %v476_v52 = vsel %vm307_vm1, %v471_v50, -inf }
 0x2e1   : > { %477 = vmax.xlane.f32.xlu1 %v476_v52  ;;  %v473_v53 = vpop.f32.mrf.mxu1 }
 0x2e3   : > { %v993_v54 = vpop.f32.mrf.mxu1 }
 0x2e5   : > { %v602_v55 = vpop.f32.mrf.mxu1 }
 0x2e6   : > { %v603_v56 = vadd.f32 %v1180_v5, %v602_v55 }
 0x2e7   : > { %v1004_v57 = vpop.f32.mrf.mxu1 }
 0x2e8   : > { %v608_v58 = vsel %vm307_vm1, %v603_v56, -inf }
 0x2e9   : > { %609 = vmax.xlane.f32.xlu0 %v608_v58  ;;  %v605_v59 = vpop.f32.mrf.mxu1 }
 0x2eb   : > { %v1005_v60 = vpop.f32.mrf.mxu1 }
 0x2ed   : > { %v734_v61 = vpop.f32.mrf.mxu1 }
 0x2ee   : > { %v735_v62 = vadd.f32 %v1180_v5, %v734_v61 }
 0x2ef   : > { %v1016_v63 = vpop.f32.mrf.mxu1 }
 0x2f0   : > { %v740_v1 = vsel %vm307_vm1, %v735_v62, -inf }
 0x2f1   : > { %741 = vmax.xlane.f32.xlu1 %v740_v1  ;;  %v737_v2 = vpop.f32.mrf.mxu1 }
 0x2f3   : > { %v1017_v3 = vpop.f32.mrf.mxu1 }
 0x36a   : > { %v478_v4 = vpop.xlane.xlu1 %477 }
 0x36b   : > { %v479_v6 = vsub.f32 %v471_v50, %v478_v4 }
 0x36d   : > { %v480_v7 = vmul.f32 1.442695, %v479_v6 }
 0x36f   : > { %1066 = vpow2.f32 %v480_v7 }
 0x372   : > { %v610_v8 = vpop.xlane.xlu0 %609 }
 0x373   : > { %v611_v9 = vsub.f32 %v603_v56, %v610_v8 }
 0x375   : > { %v612_v10 = vmul.f32 1.442695, %v611_v9 }
 0x377   : > { %1068 = vpow2.f32 %v612_v10 }
 0x37a   : > { %v742_v15 = vpop.xlane.xlu1 %741 }
 0x37b   : > { %v743_v17 = vsub.f32 %v735_v62, %v742_v15 }
 0x37c   : > { %v1067_v11 = vpop.eup %1066 }
 0x37d   : > { %v482_v12 = vsel %vm307_vm1, %v1067_v11, 0.0  ;;  %v744_v18 = vmul.f32 1.442695, %v743_v17 }
 0x37e   : > { %483 = vadd.xlane.f32.xlu1 %v482_v12 }
 0x37f   : > { %1070 = vpow2.f32 %v744_v18 }
 0x384   : > { %v1069_v5 = vpop.eup %1068 }
 0x385   : > { %v614_v13 = vsel %vm307_vm1, %v1069_v5, 0.0 }
 0x386   : > { %615 = vadd.xlane.f32.xlu0 %v614_v13 }
 0x38c   : > { %v1071_v19 = vpop.eup %1070 }
 0x38d   : > { %v746_v20 = vsel %vm307_vm1, %v1071_v19, 0.0 }
 0x38f   : > { %623 = vrot.lane.b32.xlu1 %v1059_v14, %s1105_s30 }
 0x39c   : > { %491 = vrot.lane.b32.xlu0 %v1060_v16, %s1104_s29 }
 0x3b3   : > { %747 = vadd.xlane.f32.xlu1 %v746_v20 }
 0x3c4   : > { %755 = vrot.lane.b32.xlu1 %v1061_v21, %s1106_s5 }
 0x407   : > { %v484_v22 = vpop.xlane.xlu1 %483 }
 0x408   : > { %1072 = vrcp.f32 %v484_v22 }
 0x40b   : > { %v624_v28 = vpop.permute.xlu1 %623 }
 0x40c   : > { %v629_v30 = vsel %vm369_vm2, %v624_v28, 0 }
 0x40f   : > { %v616_v23 = vpop.xlane.xlu0 %615 }
 0x410   : > { %1074 = vrcp.f32 %v616_v23 }
 0x413   : > { %v492_v24 = vpop.permute.xlu0 %491 }
 0x414   : > { %v497_v25 = vsel %vm369_vm2, %v492_v24, 0 }
 0x415   : > { %v1073_v26 = vpop.eup %1072  ;;  %995 = vmatpush3.bf16.msra.mxu0 %v497_v25 }
 0x416   : > { %1006 = vmatprep.subr.bf16.mxu0 %v1102_v0  ;;  %v486_v27 = vmul.f32 %v1073_v26, %v1067_v11 }
 0x418   : > { %v487_v29 = vpack.c.bf16 %v486_v27, %v486_v27 }
 0x41a   : > { %997 = vmatmul.mubr.msk.bf16.vlgmr.msra.gmra.mxu0 %vm307_vm1, %v487_v29 }
 0x41b   : > { %1007 = vmatpush3.bf16.msra.mxu0 %v629_v30  ;;  %1008 = vmatprep.mubr.msk.bf16.mxu0 %vm1103_vm0, %v1102_v0 }
 0x41c   : > { %1018 = vmatprep.subr.bf16.mxu0 %v1102_v0 }
 0x41d   : > { %v1075_v31 = vpop.eup %1074 }
 0x41e   : > { %v618_v32 = vmul.f32 %v1075_v31, %v1069_v5 }
 0x420   : > { %v619_v33 = vpack.c.bf16 %v618_v32, %v618_v32 }
 0x422   : > { %1009 = vmatmul.mubr.msk.bf16.vlgmr.msra.gmra.mxu0 %vm307_vm1, %v619_v33 }
 0x423   : > { %1020 = vmatprep.mubr.msk.bf16.mxu0 %vm1103_vm0, %v1102_v0 }
 0x43c   : > { %v748_v34 = vpop.xlane.xlu1 %747 }
 0x43d   : > { %1076 = vrcp.f32 %v748_v34 }
 0x440   : > { %v756_v35 = vpop.permute.xlu1 %755 }
 0x441   : > { %v761_v36 = vsel %vm369_vm2, %v756_v35, 0 }
 0x442   : > { %1019 = vmatpush3.bf16.msra.mxu0 %v761_v36 }
 0x44a   : > { %v1077_v37 = vpop.eup %1076 }
 0x44b   : > { %v750_v38 = vmul.f32 %v1077_v37, %v1071_v19 }
 0x44d   : > { %v751_v39 = vpack.c.bf16 %v750_v38, %v750_v38 }
 0x44f   : > { %1021 = vmatmul.mubr.msk.bf16.vlgmr.msra.gmra.mxu0 %vm307_vm1, %v751_v39 }
 0x4da   : > { %v533_v40 = vpop.f32.mrf.mxu0 }
 0x4db   : > { %v957_v41 = vpack.c.bf16 %v533_v40, %v533_v40 }
 0x4dc   : > { %v998_v42 = vpop.f32.mrf.mxu0 }
 0x4dd   : > { %543 = vrot.lane.b32.xlu0 %v957_v41, %s1107_s12 }
 0x4de   : > { %v536_v43 = vpop.f32.mrf.mxu0 }
 0x4e0   : > { %v999_v44 = vpop.f32.mrf.mxu0 }
 0x4e2   : > { %v665_v45 = vpop.f32.mrf.mxu0 }
 0x4e3   : > { %v958_v0 = vpack.c.bf16 %v665_v45, %v665_v45 }
 0x4e4   : > { %v1010_v46 = vpop.f32.mrf.mxu0 }
 0x4e5   : > { %675 = vrot.lane.b32.xlu1 %v958_v0, %s1108_s13 }
 0x4e6   : > { %v668_v47 = vpop.f32.mrf.mxu0 }
 0x4e8   : > { %v1011_v48 = vpop.f32.mrf.mxu0 }
 0x50f   : > { %v797_v49 = vpop.f32.mrf.mxu0 }
 0x510   : > { %v959_v50 = vpack.c.bf16 %v797_v49, %v797_v49 }
 0x511   : > { %v1022_v51 = vpop.f32.mrf.mxu0 }
 0x512   : > { %807 = vrot.lane.b32.xlu0 %v959_v50, %s1109_s14 }
 0x513   : > { %v800_v52 = vpop.f32.mrf.mxu0 }
 0x515   : > { %v1023_v53 = vpop.f32.mrf.mxu0 }
 0x54f   : > { %v544_v54 = vpop.permute.xlu0 %543 }
 0x550   : > { %547 = vst.msk [vmem:[%s1222_s11] sm:$0xf] %vm546_vm4, %v544_v54 }
 0x557   : > { %v676_v55 = vpop.permute.xlu1 %675 }
 0x558   : > { %679 = vst.msk [vmem:[%s1222_s11] sm:$0xf] %vm678_vm5, %v676_v55 }
 0x584   : > { %v808_v56 = vpop.permute.xlu0 %807 }
 0x585   : > { %811 = vst.msk [vmem:[%s1222_s11] sm:$0xf] %vm810_vm6, %v808_v56 }
 0x586 PF: > { %s14_s17 = sadd.s32 1, %s1100_s17   ;;  %s1269_s15 = smov %s1096_s16 }
 0x587   : > { %p11_p5 = scmp.ge.s32.totalorder %s14_s17, 4   ;;  %s1270_s16 = smov %s1272_s18 }
 0x589   :  { %13 = sbr.rel (!%p11_p5) target bundleno = 2 (0x2), region = 75 }

// kernel: _lambda_.20
= control target key start
LH: loop header
LB: loop body
LE: loop exit
PB: predicated region body
PF: predicated region fallthrough
CT: control target
= control target key end

     0   :  { %vm27_vm0 = vcmask 261120   ;;  %vm81_vm1 = vcmask 257024   ;;  %s153_s0 = inlined_call_operand.vmem [shape: bf16[16,32], index: 0, kind: input, shape index: {}]   ;;  %s154_s1 = inlined_call_operand.vmem [shape: bf16[16,32], index: 1, kind: input, shape index: {}]   ;;  %s155_s2 = inlined_call_operand.vmem [shape: f32[1,32], index: 2, kind: input, shape index: {}]   ;;  %s156_s3 = inlined_call_operand.vmem [shape: f32[1,32], index: 3, kind: input, shape index: {}]   ;;  %s157_s4 = inlined_call_operand.vmem [shape: bf16[16,32], index: 4, kind: output, shape index: {}]  }
   0x1   :  { %v95_v0 = vld [vmem:[%s153_s0] sm:$0xff]  }
   0x2   :  { %v99_v1 = vld [vmem:[%s154_s1] sm:$0xff]   ;;  %v96_v2 = vunpack.c.l.bf16 %v95_v0  ;;  %v97_v4 = vunpack.c.h.bf16 %v95_v0 }
   0x3   :  { %v100_v3 = vunpack.c.l.bf16 %v99_v1  ;;  %v101_v5 = vunpack.c.h.bf16 %v99_v1  ;;  %v88_v27 = vld [vmem:[%s155_s2] ss:$0 sm:$0xff] }
   0x4   :  { %v89_v29 = vld [vmem:[%s156_s3] ss:$0 sm:$0xff] }
   0x5   :  { %v25_v6 = vadd.f32 %v100_v3, %v96_v2  ;;  %v26_v7 = vadd.f32 %v101_v5, %v97_v4 }
   0x7   :  { %v28_v8 = vsel %vm27_vm0, %v25_v6, 0.0  ;;  %v31_v9 = vsel %vm27_vm0, %v26_v7, 0.0 }
   0x8   :  { %29 = vadd.xlane.f32.xlu0 %v28_v8 }
   0xc   :  { %32 = vadd.xlane.f32.xlu0 %v31_v9 }
  0x91   :  { %v30_v10 = vpop.xlane.xlu0 %29 }
  0x92   :  { %v35_v11 = vmul.f32 0.03125, %v30_v10 }
  0x94   :  { %v37_v12 = vsub.f32 %v25_v6, %v35_v11 }
  0x95   :  { %v33_v13 = vpop.xlane.xlu0 %32 }
  0x96   :  { %v36_v14 = vmul.f32 0.03125, %v33_v13  ;;  %v39_v15 = vmul.f32 %v37_v12, %v37_v12 }
  0x98   :  { %v38_v16 = vsub.f32 %v26_v7, %v36_v14  ;;  %v41_v17 = vsel %vm27_vm0, %v39_v15, 0.0 }
  0x99   :  { %42 = vadd.xlane.f32.xlu1 %v41_v17 }
  0x9a   :  { %v40_v18 = vmul.f32 %v38_v16, %v38_v16 }
  0x9c   :  { %v44_v19 = vsel %vm27_vm0, %v40_v18, 0.0 }
  0x9d   :  { %45 = vadd.xlane.f32.xlu1 %v44_v19 }
 0x122   :  { %v43_v20 = vpop.xlane.xlu1 %42 }
 0x123   :  { %v47_v21 = vmul.f32 0.03125, %v43_v20 }
 0x125   :  { %v49_v22 = vadd.f32 1e-12, %v47_v21 }
 0x126   :  { %v46_v23 = vpop.xlane.xlu1 %45 }
 0x127   :  { %102 = vrsqrt.f32 %v49_v22  ;;  %v48_v24 = vmul.f32 0.03125, %v46_v23 }
 0x129   :  { %v50_v25 = vadd.f32 1e-12, %v48_v24 }
 0x12b   :  { %104 = vrsqrt.f32 %v50_v25 }
 0x134   :  { %v103_v26 = vpop.eup %102 }
 0x135   :  { %v53_v28 = vmul.f32 %v103_v26, %v37_v12 }
 0x137   :  { %v62_v30 = vmul.f32 %v88_v27, %v53_v28 }
 0x138   :  { %v105_v31 = vpop.eup %104 }
 0x139   :  { %v71_v32 = vadd.f32 %v89_v29, %v62_v30  ;;  %v54_v33 = vmul.f32 %v105_v31, %v38_v16 }
 0x13b   :  { %v92_v34 = vpack.c.bf16 %v71_v32, %v71_v32  ;;  %v63_v35 = vmul.f32 %v88_v27, %v54_v33 }
 0x13d   :  { %82 = vst.msk [vmem:[%s157_s4] sm:$0xf] %vm81_vm1, %v92_v34  ;;  %v72_v36 = vadd.f32 %v89_v29, %v63_v35 }
 0x13f   :  { %v93_v37 = vpack.c.bf16 %v72_v36, %v72_v36 }
 0x141   :  { %83 = vst.msk [vmem:[%s157_s4 + $0x4] sm:$0xf] %vm81_vm1, %v93_v37 }

// kernel: _lambda_.22
= control target key start
LH: loop header
LB: loop body
LE: loop exit
PB: predicated region body
PF: predicated region fallthrough
CT: control target
= control target key end

     0   :  { %vm19_vm0 = vcmask 261120   ;;  %v177_v0 = vmov 0.0   ;;  %vm178_vm1 = vmmov 0   ;;  %vm63_vm2 = vcmask 523264   ;;  %s227_s1 = inlined_call_operand.vmem [shape: bf16[64,32], index: 1, kind: input, shape index: {}]   ;;  %s228_s0 = inlined_call_operand.vmem [shape: bf16[16,64], index: 0, kind: input, shape index: {}]   ;;  %s229_s2 = inlined_call_operand.vmem [shape: f32[1,32], index: 2, kind: input, shape index: {}]   ;;  %s230_s3 = inlined_call_operand.vmem [shape: bf16[16,32], index: 3, kind: output, shape index: {}]  }
   0x1   :  { %158 = vmatprep.subr.bf16.mxu0 %v177_v0  ;;  %v172_v1 = vld [vmem:[%s227_s1 + $0x18] sm:$0xff]   ;;  %166 = vmatprep.mubr.msk.bf16.mxu0 %vm178_vm1, %v177_v0  ;;  %20 = vst.msk [vmem:[#allocation2] sm:$0xff] %vm19_vm0, %v177_v0  ;;  %21 = vst.msk [vmem:[#allocation2 + $0x8] sm:$0xff] %vm19_vm0, %v177_v0  ;;  %v173_v2 = vld [vmem:[%s227_s1 + $0x10] sm:$0xff]   ;;  %vm135_vm3 = vcmask 257024  }
   0x2   :  { %159 = vmatpush3.bf16.msra.mxu0 %v172_v1  ;;  %v174_v3 = vld [vmem:[%s227_s1 + $0x8] sm:$0xff]   ;;  %v175_v4 = vld [vmem:[%s227_s1] sm:$0xff]  }
   0x3   :  { %160 = vmatprep.subr.bf16.mxu0 %v177_v0  ;;  %v176_v5 = vld [vmem:[%s228_s0] sm:$0xff]  }
   0x4   :  { %v148_v14 = vld [vmem:[%s229_s2] ss:$0 sm:$0xff] }
   0x6   :  { %161 = vmatpush3.bf16.msra.mxu0 %v173_v2 }
   0x7   :  { %162 = vmatprep.subr.bf16.mxu0 %v177_v0 }
   0x8   :  { %v22_v6 = vld [vmem:[#allocation2] sm:$0xff]  ;;  %v23_v10 = vld [vmem:[#allocation2 + $0x8] sm:$0xff] }
   0xa   :  { %163 = vmatpush3.bf16.msra.mxu0 %v174_v3 }
   0xb   :  { %164 = vmatprep.subr.bf16.mxu0 %v177_v0 }
   0xe   :  { %165 = vmatpush3.bf16.msra.mxu0 %v175_v4 }
  0x11   :  { %167 = vmatmul.mubr.msk.bf16.vlgmr.msra.gmra.mxu0 %vm63_vm2, %v176_v5 }
  0xd1   :  { %v101_v7 = vpop.f32.mrf.mxu0 }
  0xd2   :  { %v108_v8 = vadd.f32 %v101_v7, %v22_v6 }
  0xd3   :  { %v168_v9 = vpop.f32.mrf.mxu0 }
  0xd4   :  { %111 = vst.msk [vmem:[#allocation2] sm:$0xff] %vm19_vm0, %v108_v8 }
  0xd5   :  { %v104_v11 = vpop.f32.mrf.mxu0 }
  0xd6   :  { %v109_v12 = vadd.f32 %v104_v11, %v23_v10 }
  0xd7   :  { %v169_v13 = vpop.f32.mrf.mxu0 }
  0xd8   :  { %112 = vst.msk [vmem:[#allocation2 + $0x8] sm:$0xff] %vm19_vm0, %v109_v12 }
  0xdb   :  { %v116_v15 = vld [vmem:[#allocation2] sm:$0xff] }
  0xdc   :  { %v125_v16 = vadd.f32 %v148_v14, %v116_v15 }
  0xde   :  { %v151_v17 = vpack.c.bf16 %v125_v16, %v125_v16 }
  0xdf   :  { %v117_v18 = vld [vmem:[#allocation2 + $0x8] sm:$0xff] }
  0xe0   :  { %136 = vst.msk [vmem:[%s230_s3] sm:$0xf] %vm135_vm3, %v151_v17  ;;  %v126_v19 = vadd.f32 %v148_v14, %v117_v18 }
  0xe2   :  { %v152_v20 = vpack.c.bf16 %v126_v19, %v126_v19 }
  0xe4   :  { %137 = vst.msk [vmem:[%s230_s3 + $0x4] sm:$0xf] %vm135_vm3, %v152_v20 }

// kernel: _lambda_.21
= control target key start
LH: loop header
LB: loop body
LE: loop exit
PB: predicated region body
PF: predicated region fallthrough
CT: control target
= control target key end

     0   :  { %vm19_vm0 = vcmask 523264   ;;  %v165_v0 = vmov 0.0   ;;  %vm166_vm1 = vmmov 0   ;;  %vm47_vm2 = vcmask 261120   ;;  %s209_s1 = inlined_call_operand.vmem [shape: bf16[32,64], index: 1, kind: input, shape index: {}]   ;;  %s210_s0 = inlined_call_operand.vmem [shape: bf16[16,32], index: 0, kind: input, shape index: {}]   ;;  %s211_s2 = inlined_call_operand.vmem [shape: f32[1,64], index: 2, kind: input, shape index: {}]   ;;  %s212_s3 = inlined_call_operand.vmem [shape: bf16[16,64], index: 3, kind: output, shape index: {}]  }
   0x1   :  { %148 = vmatprep.subr.bf16.mxu0 %v165_v0  ;;  %v158_v1 = vld [vmem:[%s209_s1 + $0x8] sm:$0xff]   ;;  %152 = vmatprep.mubr.msk.bf16.mxu0 %vm166_vm1, %v165_v0  ;;  %20 = vst.msk [vmem:[#allocation2] sm:$0xff] %vm19_vm0, %v165_v0  ;;  %21 = vst.msk [vmem:[#allocation2 + $0x8] sm:$0xff] %vm19_vm0, %v165_v0  ;;  %v159_v2 = vld [vmem:[%s209_s1] sm:$0xff]   ;;  %vm129_vm3 = vcmask 519168  }
   0x2   :  { %149 = vmatpush3.bf16.msra.mxu0 %v158_v1  ;;  %v160_v3 = vld [vmem:[%s210_s0] sm:$0xff]  }
   0x3   :  { %150 = vmatprep.subr.bf16.mxu0 %v165_v0  ;;  %v140_v12 = vld [vmem:[%s211_s2] ss:$0 sm:$0xff] }
   0x6   :  { %151 = vmatpush3.bf16.msra.mxu0 %v159_v2 }
   0x8   :  { %v22_v4 = vld [vmem:[#allocation2] sm:$0xff]  ;;  %v23_v8 = vld [vmem:[#allocation2 + $0x8] sm:$0xff] }
   0x9   :  { %153 = vmatmul.mubr.msk.bf16.vlgmr.msra.gmra.mxu0 %vm47_vm2, %v160_v3 }
  0xc9   :  { %v85_v5 = vpop.f32.mrf.mxu0 }
  0xca   :  { %v92_v6 = vadd.f32 %v85_v5, %v22_v4 }
  0xcb   :  { %v154_v7 = vpop.f32.mrf.mxu0 }
  0xcc   :  { %95 = vst.msk [vmem:[#allocation2] sm:$0xff] %vm19_vm0, %v92_v6 }
  0xcd   :  { %v88_v9 = vpop.f32.mrf.mxu0 }
  0xce   :  { %v93_v10 = vadd.f32 %v88_v9, %v23_v8 }
  0xcf   :  { %v155_v11 = vpop.f32.mrf.mxu0 }
  0xd0   :  { %96 = vst.msk [vmem:[#allocation2 + $0x8] sm:$0xff] %vm19_vm0, %v93_v10 }
  0xd3   :  { %v100_v13 = vld [vmem:[#allocation2] sm:$0xff] }
  0xd4   :  { %v109_v14 = vadd.f32 %v140_v12, %v100_v13 }
  0xd6   :  { %v113_v15 = vmul.f32 0.70710677, %v109_v14  ;;  %v111_v20 = vmul.f32 0.5, %v109_v14 }
  0xd7   :  { %v101_v16 = vld [vmem:[#allocation2 + $0x8] sm:$0xff] }
  0xd8   :  { %161 = verf.f32 %v113_v15  ;;  %v110_v17 = vadd.f32 %v140_v12, %v101_v16 }
  0xda   :  { %v114_v18 = vmul.f32 0.70710677, %v110_v17  ;;  %v112_v25 = vmul.f32 0.5, %v110_v17 }
  0xdc   :  { %163 = verf.f32 %v114_v18 }
  0xe5   :  { %v162_v19 = vpop.eup %161 }
  0xe6   :  { %v117_v21 = vadd.f32 1.0, %v162_v19 }
  0xe8   :  { %v119_v22 = vmul.f32 %v117_v21, %v111_v20 }
  0xe9   :  { %v164_v23 = vpop.eup %163 }
  0xea   :  { %v143_v24 = vpack.c.bf16 %v119_v22, %v119_v22  ;;  %v118_v26 = vadd.f32 1.0, %v164_v23 }
  0xec   :  { %130 = vst.msk [vmem:[%s212_s3] sm:$0xf] %vm129_vm3, %v143_v24  ;;  %v120_v27 = vmul.f32 %v118_v26, %v112_v25 }
  0xee   :  { %v144_v28 = vpack.c.bf16 %v120_v27, %v120_v27 }
  0xf0   :  { %131 = vst.msk [vmem:[%s212_s3 + $0x4] sm:$0xf] %vm129_vm3, %v144_v28 }

// kernel: _lambda_.31
= control target key start
LH: loop header
LB: loop body
LE: loop exit
PB: predicated region body
PF: predicated region fallthrough
CT: control target
= control target key end

     0   :  { %vm19_vm0 = vcmask 130048   ;;  %v138_v0 = vmov 0.0   ;;  %vm139_vm1 = vmmov 0   ;;  %vm47_vm2 = vcmask 261120   ;;  %s184_s1 = inlined_call_operand.vmem [shape: bf16[32,16], index: 1, kind: input, shape index: {}]   ;;  %s185_s0 = inlined_call_operand.vmem [shape: bf16[16,32], index: 0, kind: input, shape index: {}]   ;;  %s186_s2 = inlined_call_operand.vmem [shape: f32[1,16], index: 2, kind: input, shape index: {}]   ;;  %s187_s3 = inlined_call_operand.vmem [shape: f32[16,16], index: 3, kind: output, shape index: {}]  }
   0x1   :  { %125 = vmatprep.subr.bf16.mxu0 %v138_v0  ;;  %v135_v1 = vld [vmem:[%s184_s1 + $0x8] sm:$0xff]   ;;  %129 = vmatprep.mubr.msk.bf16.mxu0 %vm139_vm1, %v138_v0  ;;  %20 = vst.msk [vmem:[#allocation2] sm:$0xff] %vm19_vm0, %v138_v0  ;;  %21 = vst.msk [vmem:[#allocation2 + $0x8] sm:$0xff] %vm19_vm0, %v138_v0  ;;  %v136_v2 = vld [vmem:[%s184_s1] sm:$0xff]  }
   0x2   :  { %126 = vmatpush3.bf16.msra.mxu0 %v135_v1  ;;  %v137_v3 = vld [vmem:[%s185_s0] sm:$0xff]  }
   0x3   :  { %127 = vmatprep.subr.bf16.mxu0 %v138_v0  ;;  %v121_v12 = vld [vmem:[%s186_s2] ss:$0 sm:$0xff] }
   0x6   :  { %128 = vmatpush3.bf16.msra.mxu0 %v136_v2 }
   0x8   :  { %v22_v4 = vld [vmem:[#allocation2] sm:$0xff]  ;;  %v23_v8 = vld [vmem:[#allocation2 + $0x8] sm:$0xff] }
   0x9   :  { %130 = vmatmul.mubr.msk.bf16.vlgmr.msra.gmra.mxu0 %vm47_vm2, %v137_v3 }
  0xc9   :  { %v85_v5 = vpop.f32.mrf.mxu0 }
  0xca   :  { %v92_v6 = vadd.f32 %v85_v5, %v22_v4 }
  0xcb   :  { %v131_v7 = vpop.f32.mrf.mxu0 }
  0xcc   :  { %95 = vst.msk [vmem:[#allocation2] sm:$0xff] %vm19_vm0, %v92_v6 }
  0xcd   :  { %v88_v9 = vpop.f32.mrf.mxu0 }
  0xce   :  { %v93_v10 = vadd.f32 %v88_v9, %v23_v8 }
  0xcf   :  { %v132_v11 = vpop.f32.mrf.mxu0 }
  0xd0   :  { %96 = vst.msk [vmem:[#allocation2 + $0x8] sm:$0xff] %vm19_vm0, %v93_v10 }
  0xd3   :  { %v100_v13 = vld [vmem:[#allocation2] sm:$0xff] }
  0xd4   :  { %v109_v14 = vadd.f32 %v121_v12, %v100_v13 }
  0xd6   :  { %111 = vst.msk [vmem:[%s187_s3] sm:$0xff] %vm19_vm0, %v109_v14 }
  0xd7   :  { %v101_v15 = vld [vmem:[#allocation2 + $0x8] sm:$0xff] }
  0xd8   :  { %v110_v16 = vadd.f32 %v121_v12, %v101_v15 }
  0xda   :  { %112 = vst.msk [vmem:[%s187_s3 + $0x8] sm:$0xff] %vm19_vm0, %v110_v16 }

</bundles_post_ra>
